<compile_context>
chip_gen: v7x
topology: tpu7x:2x2x1
jax: 0.10.0
libtpu: 0.0.40
codegen_flags: <defaults>
</compile_context>

<pallas_src>
import math
import jax
import jax.numpy as jnp
from jax.experimental import pallas as pl
from jax.experimental.pallas import tpu as pltpu

NUM_HEADS = 4
LN_EPS = 1e-12


def _gelu_new(x):
    # HF "gelu_new" (tanh approximation) -- ALBERT's default hidden activation.
    return 0.5 * x * (1.0 + jnp.tanh(
        jnp.sqrt(2.0 / jnp.pi) * (x + 0.044715 * x * x * x)))


def _layernorm(x, g, b):
    mu = jnp.mean(x, axis=-1, keepdims=True)
    var = jnp.mean(jnp.square(x - mu), axis=-1, keepdims=True)
    return (x - mu) * jax.lax.rsqrt(var + LN_EPS) * g + b


def albert_group_kernel(x_ref, mask_ref,
                        wqkv_r, bqkv_r, wd_r, bd_r, g_attn_r, b_attn_r,
                        wf_r, bf_r, wfo_r, bfo_r,
                        w_down_r, b_down_r, w_up_r, b_up_r,
                        g_full_r, b_full_r, g_adpt_r, b_adpt_r,
                        out_ref):
    B, S, H = x_ref.shape
    L = wqkv_r.shape[0]
    dh = H // NUM_HEADS
    scale = 1.0 / math.sqrt(dh)

    mask = mask_ref[...]                       # (B, 1, S) additive mask
    h2d = x_ref[...].reshape(B * S, H)         # fold batch into sublanes
    adpt2d = h2d                               # overwritten every layer

    for l in range(L):                         # static unroll over inner layers
        x2d = h2d

        # ---- self attention: fused QKV ----
        qkv = jnp.dot(x2d, wqkv_r[l],
                      preferred_element_type=jnp.float32) + bqkv_r[l]  # (B*S, 3H)

        ctx_heads = []
        for h in range(NUM_HEADS):             # static unroll over heads
            q_h = qkv[:, h * dh:(h + 1) * dh].reshape(B, S, dh)
            k_h = qkv[:, H + h * dh:H + (h + 1) * dh].reshape(B, S, dh)
            v_h = qkv[:, 2 * H + h * dh:2 * H + (h + 1) * dh].reshape(B, S, dh)

            s = jnp.einsum('bqd,bkd->bqk', q_h, k_h,
                           preferred_element_type=jnp.float32) * scale
            s = s + mask                        # (B,S,S) + (B,1,S) broadcast

            # manual softmax; denominator reciprocal on the EUP slot
            m = jnp.max(s, axis=-1, keepdims=True)
            e = jnp.exp(s - m)
            p = e * pl.reciprocal(jnp.sum(e, axis=-1, keepdims=True),
                                  approx=True)
            # attention_probs dropout is identity in eval; head_mask is None.

            ctx_h = jnp.einsum('bqk,bkd->bqd', p, v_h,
                               preferred_element_type=jnp.float32)
            ctx_heads.append(ctx_h.reshape(B * S, dh))

        # Concatenated head contexts + single output projection
        # (== torch.einsum('bfnd,ndh->bfh', context, dense.weight.t().view(n,d,h)) + b)
        ctx = jnp.concatenate(ctx_heads, axis=-1)                    # (B*S, H)
        proj = jnp.dot(ctx, wd_r[l],
                       preferred_element_type=jnp.float32) + bd_r[l]
        attn_out = _layernorm(x2d + proj, g_attn_r[l], b_attn_r[l])

        # ---- FFN ----
        ffn = jnp.dot(attn_out, wf_r[l],
                      preferred_element_type=jnp.float32) + bf_r[l]
        ffn = _gelu_new(ffn)
        ffn = jnp.dot(ffn, wfo_r[l],
                      preferred_element_type=jnp.float32) + bfo_r[l]

        # ---- Adapter ----
        # TODO(synk): Adapter class definition is not in the reference spec;
        # implementing the standard bottleneck adapter:
        #   adapter(attn_out, ffn_out) = up(gelu(down(attn_out))) + ffn_out
        a = jnp.dot(attn_out, w_down_r[l],
                    preferred_element_type=jnp.float32) + b_down_r[l]
        a = _gelu_new(a)
        a = jnp.dot(a, w_up_r[l],
                    preferred_element_type=jnp.float32) + b_up_r[l]
        adapter_h = a + ffn

        # ---- Final LayerNorms ----
        h2d = _layernorm(ffn + attn_out, g_full_r[l], b_full_r[l])
        adpt2d = _layernorm(adapter_h + attn_out, g_adpt_r[l], b_adpt_r[l])

    out_ref[0] = h2d.reshape(B, S, H)
    out_ref[1] = adpt2d.reshape(B, S, H)


def albert_layer_group(x, mask, stacked_params):
    """AlbertLayerGroup.forward (output_attentions=output_hidden_states=False).

    x: (B, S, H) f32; mask: (B, 1, S) additive.
    Returns (hidden_states, adapter_hidden_states), both (B, S, H).
    """
    B, S, H = x.shape
    L = stacked_params[0].shape[0]
    I = stacked_params[6].shape[-1]        # wf: (L, H, I)
    A = stacked_params[12].shape[-1]       # w_down: (L, H, A)
    BS = B * S
    dh = H // NUM_HEADS

    def full_spec(p):
        nd = p.ndim
        return pl.BlockSpec(p.shape, lambda i, nd=nd: (0,) * nd)

    in_specs = ([pl.BlockSpec((B, S, H), lambda i: (0, 0, 0)),
                 pl.BlockSpec((B, 1, S), lambda i: (0, 0, 0))]
                + [full_spec(p) for p in stacked_params])
    out_spec = pl.BlockSpec((2, B, S, H), lambda i: (0, 0, 0, 0))

    flops_per_layer = (
        2 * BS * H * (3 * H)                       # fused QKV
        + 2 * B * NUM_HEADS * S * S * dh * 2       # scores + context
        + 2 * BS * H * H                           # output projection
        + 2 * BS * H * I + 2 * BS * I * H          # FFN
        + 2 * BS * H * A + 2 * BS * A * H)         # adapter
    transc_per_layer = B * NUM_HEADS * S * S + BS * (I + A)
    bytes_accessed = 4 * (x.size + mask.size
                          + sum(int(p.size) for p in stacked_params)
                          + 2 * B * S * H)
    cost = pl.CostEstimate(flops=L * flops_per_layer,
                           transcendentals=L * transc_per_layer,
                           bytes_accessed=bytes_accessed)

    fn = pl.pallas_call(
        albert_group_kernel,
        grid=(1,),
        in_specs=in_specs,
        out_specs=out_spec,
        out_shape=jax.ShapeDtypeStruct((2, B, S, H), jnp.float32),
        compiler_params=pltpu.CompilerParams(
            dimension_semantics=("arbitrary",)),
        cost_estimate=cost,
    )
    packed = fn(x, mask, *stacked_params)
    return packed[0], packed[1]


def init_layer_params(key, H, I, A):
    """Deterministic init. Linear weights stored as (in, out); biases (1, out)."""
    std = 0.02
    ks = jax.random.split(key, 8)

    def lin(k, din, dout):
        k1, k2 = jax.random.split(k)
        w = jax.random.normal(k1, (din, dout), jnp.float32) * std
        b = jax.random.normal(k2, (1, dout), jnp.float32) * std
        return w, b

    wq, bq = lin(ks[0], H, H)
    wk, bk = lin(ks[1], H, H)
    wv, bv = lin(ks[2], H, H)
    wqkv = jnp.concatenate([wq, wk, wv], axis=1)     # (H, 3H)
    bqkv = jnp.concatenate([bq, bk, bv], axis=1)     # (1, 3H)
    wd, bd = lin(ks[3], H, H)
    wf, bf = lin(ks[4], H, I)
    wfo, bfo = lin(ks[5], I, H)
    w_down, b_down = lin(ks[6], H, A)
    w_up, b_up = lin(ks[7], A, H)
    ones = jnp.ones((1, H), jnp.float32)
    zeros = jnp.zeros((1, H), jnp.float32)
    # Order must match the kernel signature.
    return [wqkv, bqkv, wd, bd, ones, zeros,
            wf, bf, wfo, bfo,
            w_down, b_down, w_up, b_up,
            ones, zeros, ones, zeros]


def init_group_params(key, L, H, I, A):
    """Stack per-layer params along a leading layer axis for the fused kernel."""
    keys = jax.random.split(key, L)
    per_layer = [init_layer_params(k, H, I, A) for k in keys]
    n = len(per_layer[0])
    return [jnp.stack([per_layer[l][i] for l in range(L)], axis=0)
            for i in range(n)]


if __name__ == "__main__":
    # Small config: batch=2, seq=8, hidden=32, heads=4, intermediate=64,
    # adapter bottleneck=256 (hard-coded in AlbertLayer), inner_group_num=2.
    B, S, H, I, A = 2, 8, 32, 64, 256
    INNER_GROUP_NUM = 2

    key = jax.random.PRNGKey(0)
    kx, kp = jax.random.split(key)

    x = jax.random.normal(kx, (B, S, H), jnp.float32)
    attention_mask = jnp.zeros((B, 1, S), jnp.float32)   # additive mask

    params = init_group_params(kp, INNER_GROUP_NUM, H, I, A)

    hidden, adapter_hidden = albert_layer_group(x, attention_mask, params)
    jax.block_until_ready((hidden, adapter_hidden))

    assert hidden.shape == (B, S, H) and adapter_hidden.shape == (B, S, H)
    assert bool(jnp.all(jnp.isfinite(hidden)))
    assert bool(jnp.all(jnp.isfinite(adapter_hidden)))
    print("KERNEL_OK")
</pallas_src>

<mosaic_0001>
module attributes {stable_mosaic.version = 11 : i64} {
  func.func @albert_group_kernel(%arg0: i32, %arg1: memref<2x8x32xf32, #tpu.memory_space<vmem>>, %arg2: memref<2x1x8xf32, #tpu.memory_space<vmem>>, %arg3: memref<2x32x96xf32, #tpu.memory_space<vmem>>, %arg4: memref<2x1x96xf32, #tpu.memory_space<vmem>>, %arg5: memref<2x32x32xf32, #tpu.memory_space<vmem>>, %arg6: memref<2x1x32xf32, #tpu.memory_space<vmem>>, %arg7: memref<2x1x32xf32, #tpu.memory_space<vmem>>, %arg8: memref<2x1x32xf32, #tpu.memory_space<vmem>>, %arg9: memref<2x32x64xf32, #tpu.memory_space<vmem>>, %arg10: memref<2x1x64xf32, #tpu.memory_space<vmem>>, %arg11: memref<2x64x32xf32, #tpu.memory_space<vmem>>, %arg12: memref<2x1x32xf32, #tpu.memory_space<vmem>>, %arg13: memref<2x32x256xf32, #tpu.memory_space<vmem>>, %arg14: memref<2x1x256xf32, #tpu.memory_space<vmem>>, %arg15: memref<2x256x32xf32, #tpu.memory_space<vmem>>, %arg16: memref<2x1x32xf32, #tpu.memory_space<vmem>>, %arg17: memref<2x1x32xf32, #tpu.memory_space<vmem>>, %arg18: memref<2x1x32xf32, #tpu.memory_space<vmem>>, %arg19: memref<2x1x32xf32, #tpu.memory_space<vmem>>, %arg20: memref<2x1x32xf32, #tpu.memory_space<vmem>>, %arg21: memref<2x2x8x32xf32, #tpu.memory_space<vmem>>) attributes {dimension_semantics = [#tpu.dimension_semantics<arbitrary>], iteration_bounds = array<i64: 1>, scalar_prefetch = 0 : i64, scratch_operands = 0 : i64, tpu.core_type = #tpu.core_type<tc>, window_params = [{pipeline_mode = #tpu.pipeline_mode<synchronous>, transform_indices = @transform_0, window_bounds = array<i64: 2, 8, 32>}, {pipeline_mode = #tpu.pipeline_mode<synchronous>, transform_indices = @transform_1, window_bounds = array<i64: 2, 1, 8>}, {pipeline_mode = #tpu.pipeline_mode<synchronous>, transform_indices = @transform_2, window_bounds = array<i64: 2, 32, 96>}, {pipeline_mode = #tpu.pipeline_mode<synchronous>, transform_indices = @transform_3, window_bounds = array<i64: 2, 1, 96>}, {pipeline_mode = #tpu.pipeline_mode<synchronous>, transform_indices = @transform_4, window_bounds = array<i64: 2, 32, 32>}, {pipeline_mode = #tpu.pipeline_mode<synchronous>, transform_indices = @transform_5, window_bounds = array<i64: 2, 1, 32>}, {pipeline_mode = #tpu.pipeline_mode<synchronous>, transform_indices = @transform_6, window_bounds = array<i64: 2, 1, 32>}, {pipeline_mode = #tpu.pipeline_mode<synchronous>, transform_indices = @transform_7, window_bounds = array<i64: 2, 1, 32>}, {pipeline_mode = #tpu.pipeline_mode<synchronous>, transform_indices = @transform_8, window_bounds = array<i64: 2, 32, 64>}, {pipeline_mode = #tpu.pipeline_mode<synchronous>, transform_indices = @transform_9, window_bounds = array<i64: 2, 1, 64>}, {pipeline_mode = #tpu.pipeline_mode<synchronous>, transform_indices = @transform_10, window_bounds = array<i64: 2, 64, 32>}, {pipeline_mode = #tpu.pipeline_mode<synchronous>, transform_indices = @transform_11, window_bounds = array<i64: 2, 1, 32>}, {pipeline_mode = #tpu.pipeline_mode<synchronous>, transform_indices = @transform_12, window_bounds = array<i64: 2, 32, 256>}, {pipeline_mode = #tpu.pipeline_mode<synchronous>, transform_indices = @transform_13, window_bounds = array<i64: 2, 1, 256>}, {pipeline_mode = #tpu.pipeline_mode<synchronous>, transform_indices = @transform_14, window_bounds = array<i64: 2, 256, 32>}, {pipeline_mode = #tpu.pipeline_mode<synchronous>, transform_indices = @transform_15, window_bounds = array<i64: 2, 1, 32>}, {pipeline_mode = #tpu.pipeline_mode<synchronous>, transform_indices = @transform_16, window_bounds = array<i64: 2, 1, 32>}, {pipeline_mode = #tpu.pipeline_mode<synchronous>, transform_indices = @transform_17, window_bounds = array<i64: 2, 1, 32>}, {pipeline_mode = #tpu.pipeline_mode<synchronous>, transform_indices = @transform_18, window_bounds = array<i64: 2, 1, 32>}, {pipeline_mode = #tpu.pipeline_mode<synchronous>, transform_indices = @transform_19, window_bounds = array<i64: 2, 1, 32>}, {pipeline_mode = #tpu.pipeline_mode<synchronous>, transform_indices = @transform_20, window_bounds = array<i64: 2, 2, 8, 32>}]} {
    %c0 = arith.constant 0 : index
    %c0_0 = arith.constant 0 : index
    %c0_1 = arith.constant 0 : index
    %0 = vector.load %arg2[%c0, %c0_0, %c0_1] : memref<2x1x8xf32, #tpu.memory_space<vmem>>, vector<2x1x8xf32>
    %c0_2 = arith.constant 0 : index
    %c0_3 = arith.constant 0 : index
    %c0_4 = arith.constant 0 : index
    %1 = vector.load %arg1[%c0_2, %c0_3, %c0_4] : memref<2x8x32xf32, #tpu.memory_space<vmem>>, vector<2x8x32xf32>
    %2 = vector.shape_cast %1 : vector<2x8x32xf32> to vector<16x32xf32>
    %c0_5 = arith.constant 0 : index
    %c0_6 = arith.constant 0 : index
    %c0_7 = arith.constant 0 : index
    %3 = vector.load %arg3[%c0_5, %c0_6, %c0_7] : memref<2x32x96xf32, #tpu.memory_space<vmem>>, vector<1x32x96xf32>
    %4 = vector.shape_cast %3 : vector<1x32x96xf32> to vector<32x96xf32>
    %cst = arith.constant dense<0.000000e+00> : vector<16x96xf32>
    %5 = tpu.matmul %2, %4, %cst {dimension_numbers = #tpu.dot_dimension_numbers<[1], [0], [0], [1], [0, 0, 1, 1], [], []>} : vector<16x32xf32>, vector<32x96xf32>, vector<16x96xf32> -> vector<16x96xf32>
    %c0_8 = arith.constant 0 : index
    %c0_9 = arith.constant 0 : index
    %c0_10 = arith.constant 0 : index
    %6 = vector.load %arg4[%c0_8, %c0_9, %c0_10] : memref<2x1x96xf32, #tpu.memory_space<vmem>>, vector<1x1x96xf32>
    %7 = vector.shape_cast %6 : vector<1x1x96xf32> to vector<1x96xf32>
    %8 = vector.broadcast %7 : vector<1x96xf32> to vector<16x96xf32>
    %9 = arith.addf %5, %8 : vector<16x96xf32>
    %10 = vector.extract_strided_slice %9 {offsets = [0, 0], sizes = [16, 8], strides = [1, 1]} : vector<16x96xf32> to vector<16x8xf32>
    %11 = vector.shape_cast %10 : vector<16x8xf32> to vector<2x8x8xf32>
    %12 = vector.extract_strided_slice %9 {offsets = [0, 32], sizes = [16, 8], strides = [1, 1]} : vector<16x96xf32> to vector<16x8xf32>
    %13 = vector.shape_cast %12 : vector<16x8xf32> to vector<2x8x8xf32>
    %14 = vector.extract_strided_slice %9 {offsets = [0, 64], sizes = [16, 8], strides = [1, 1]} : vector<16x96xf32> to vector<16x8xf32>
    %15 = vector.shape_cast %14 : vector<16x8xf32> to vector<2x8x8xf32>
    "tpu.trace_start"() <{level = 10 : i32, message = "bqd,bkd->bqk"}> : () -> ()
    %cst_11 = arith.constant dense<0.000000e+00> : vector<2x8x8xf32>
    %16 = tpu.matmul %11, %13, %cst_11 {dimension_numbers = #tpu.dot_dimension_numbers<[2], [2], [1], [1], [0, 0, 0, 1, 1, 1], [0], [0]>} : vector<2x8x8xf32>, vector<2x8x8xf32>, vector<2x8x8xf32> -> vector<2x8x8xf32>
    "tpu.trace_stop"() : () -> ()
    %cst_12 = arith.constant 0.353553385 : f32
    %17 = vector.broadcast %cst_12 : f32 to vector<2x8x8xf32>
    %18 = arith.mulf %16, %17 : vector<2x8x8xf32>
    %19 = vector.broadcast %0 : vector<2x1x8xf32> to vector<2x8x8xf32>
    %20 = arith.addf %18, %19 : vector<2x8x8xf32>
    %cst_13 = arith.constant dense<0xFF800000> : vector<2x8xf32>
    %21 = vector.multi_reduction <maximumf>, %20, %cst_13 [2] : vector<2x8x8xf32> to vector<2x8xf32>
    %22 = vector.shape_cast %21 : vector<2x8xf32> to vector<2x8x1xf32>
    %23 = vector.broadcast %22 : vector<2x8x1xf32> to vector<2x8x8xf32>
    %24 = arith.subf %20, %23 : vector<2x8x8xf32>
    %25 = math.exp %24 : vector<2x8x8xf32>
    %cst_14 = arith.constant dense<0.000000e+00> : vector<2x8xf32>
    %26 = vector.multi_reduction <add>, %25, %cst_14 [2] : vector<2x8x8xf32> to vector<2x8xf32>
    %27 = vector.shape_cast %26 : vector<2x8xf32> to vector<2x8x1xf32>
    %28 = tpu.reciprocal %27 {approx = true} : vector<2x8x1xf32> -> vector<2x8x1xf32>
    %29 = vector.broadcast %28 : vector<2x8x1xf32> to vector<2x8x8xf32>
    %30 = arith.mulf %25, %29 : vector<2x8x8xf32>
    "tpu.trace_start"() <{level = 10 : i32, message = "bqk,bkd->bqd"}> : () -> ()
    %cst_15 = arith.constant dense<0.000000e+00> : vector<2x8x8xf32>
    %31 = tpu.matmul %30, %15, %cst_15 {dimension_numbers = #tpu.dot_dimension_numbers<[2], [1], [1], [2], [0, 0, 0, 1, 1, 2], [0], [0]>} : vector<2x8x8xf32>, vector<2x8x8xf32>, vector<2x8x8xf32> -> vector<2x8x8xf32>
    "tpu.trace_stop"() : () -> ()
    %32 = vector.shape_cast %31 : vector<2x8x8xf32> to vector<16x8xf32>
    %33 = vector.extract_strided_slice %9 {offsets = [0, 8], sizes = [16, 8], strides = [1, 1]} : vector<16x96xf32> to vector<16x8xf32>
    %34 = vector.shape_cast %33 : vector<16x8xf32> to vector<2x8x8xf32>
    %35 = vector.extract_strided_slice %9 {offsets = [0, 40], sizes = [16, 8], strides = [1, 1]} : vector<16x96xf32> to vector<16x8xf32>
    %36 = vector.shape_cast %35 : vector<16x8xf32> to vector<2x8x8xf32>
    %37 = vector.extract_strided_slice %9 {offsets = [0, 72], sizes = [16, 8], strides = [1, 1]} : vector<16x96xf32> to vector<16x8xf32>
    %38 = vector.shape_cast %37 : vector<16x8xf32> to vector<2x8x8xf32>
    "tpu.trace_start"() <{level = 10 : i32, message = "bqd,bkd->bqk"}> : () -> ()
    %cst_16 = arith.constant dense<0.000000e+00> : vector<2x8x8xf32>
    %39 = tpu.matmul %34, %36, %cst_16 {dimension_numbers = #tpu.dot_dimension_numbers<[2], [2], [1], [1], [0, 0, 0, 1, 1, 1], [0], [0]>} : vector<2x8x8xf32>, vector<2x8x8xf32>, vector<2x8x8xf32> -> vector<2x8x8xf32>
    "tpu.trace_stop"() : () -> ()
    %cst_17 = arith.constant 0.353553385 : f32
    %40 = vector.broadcast %cst_17 : f32 to vector<2x8x8xf32>
    %41 = arith.mulf %39, %40 : vector<2x8x8xf32>
    %42 = vector.broadcast %0 : vector<2x1x8xf32> to vector<2x8x8xf32>
    %43 = arith.addf %41, %42 : vector<2x8x8xf32>
    %cst_18 = arith.constant dense<0xFF800000> : vector<2x8xf32>
    %44 = vector.multi_reduction <maximumf>, %43, %cst_18 [2] : vector<2x8x8xf32> to vector<2x8xf32>
    %45 = vector.shape_cast %44 : vector<2x8xf32> to vector<2x8x1xf32>
    %46 = vector.broadcast %45 : vector<2x8x1xf32> to vector<2x8x8xf32>
    %47 = arith.subf %43, %46 : vector<2x8x8xf32>
    %48 = math.exp %47 : vector<2x8x8xf32>
    %cst_19 = arith.constant dense<0.000000e+00> : vector<2x8xf32>
    %49 = vector.multi_reduction <add>, %48, %cst_19 [2] : vector<2x8x8xf32> to vector<2x8xf32>
    %50 = vector.shape_cast %49 : vector<2x8xf32> to vector<2x8x1xf32>
    %51 = tpu.reciprocal %50 {approx = true} : vector<2x8x1xf32> -> vector<2x8x1xf32>
    %52 = vector.broadcast %51 : vector<2x8x1xf32> to vector<2x8x8xf32>
    %53 = arith.mulf %48, %52 : vector<2x8x8xf32>
    "tpu.trace_start"() <{level = 10 : i32, message = "bqk,bkd->bqd"}> : () -> ()
    %cst_20 = arith.constant dense<0.000000e+00> : vector<2x8x8xf32>
    %54 = tpu.matmul %53, %38, %cst_20 {dimension_numbers = #tpu.dot_dimension_numbers<[2], [1], [1], [2], [0, 0, 0, 1, 1, 2], [0], [0]>} : vector<2x8x8xf32>, vector<2x8x8xf32>, vector<2x8x8xf32> -> vector<2x8x8xf32>
    "tpu.trace_stop"() : () -> ()
    %55 = vector.shape_cast %54 : vector<2x8x8xf32> to vector<16x8xf32>
    %56 = vector.extract_strided_slice %9 {offsets = [0, 16], sizes = [16, 8], strides = [1, 1]} : vector<16x96xf32> to vector<16x8xf32>
    %57 = vector.shape_cast %56 : vector<16x8xf32> to vector<2x8x8xf32>
    %58 = vector.extract_strided_slice %9 {offsets = [0, 48], sizes = [16, 8], strides = [1, 1]} : vector<16x96xf32> to vector<16x8xf32>
    %59 = vector.shape_cast %58 : vector<16x8xf32> to vector<2x8x8xf32>
    %60 = vector.extract_strided_slice %9 {offsets = [0, 80], sizes = [16, 8], strides = [1, 1]} : vector<16x96xf32> to vector<16x8xf32>
    %61 = vector.shape_cast %60 : vector<16x8xf32> to vector<2x8x8xf32>
    "tpu.trace_start"() <{level = 10 : i32, message = "bqd,bkd->bqk"}> : () -> ()
    %cst_21 = arith.constant dense<0.000000e+00> : vector<2x8x8xf32>
    %62 = tpu.matmul %57, %59, %cst_21 {dimension_numbers = #tpu.dot_dimension_numbers<[2], [2], [1], [1], [0, 0, 0, 1, 1, 1], [0], [0]>} : vector<2x8x8xf32>, vector<2x8x8xf32>, vector<2x8x8xf32> -> vector<2x8x8xf32>
    "tpu.trace_stop"() : () -> ()
    %cst_22 = arith.constant 0.353553385 : f32
    %63 = vector.broadcast %cst_22 : f32 to vector<2x8x8xf32>
    %64 = arith.mulf %62, %63 : vector<2x8x8xf32>
    %65 = vector.broadcast %0 : vector<2x1x8xf32> to vector<2x8x8xf32>
    %66 = arith.addf %64, %65 : vector<2x8x8xf32>
    %cst_23 = arith.constant dense<0xFF800000> : vector<2x8xf32>
    %67 = vector.multi_reduction <maximumf>, %66, %cst_23 [2] : vector<2x8x8xf32> to vector<2x8xf32>
    %68 = vector.shape_cast %67 : vector<2x8xf32> to vector<2x8x1xf32>
    %69 = vector.broadcast %68 : vector<2x8x1xf32> to vector<2x8x8xf32>
    %70 = arith.subf %66, %69 : vector<2x8x8xf32>
    %71 = math.exp %70 : vector<2x8x8xf32>
    %cst_24 = arith.constant dense<0.000000e+00> : vector<2x8xf32>
    %72 = vector.multi_reduction <add>, %71, %cst_24 [2] : vector<2x8x8xf32> to vector<2x8xf32>
    %73 = vector.shape_cast %72 : vector<2x8xf32> to vector<2x8x1xf32>
    %74 = tpu.reciprocal %73 {approx = true} : vector<2x8x1xf32> -> vector<2x8x1xf32>
    %75 = vector.broadcast %74 : vector<2x8x1xf32> to vector<2x8x8xf32>
    %76 = arith.mulf %71, %75 : vector<2x8x8xf32>
    "tpu.trace_start"() <{level = 10 : i32, message = "bqk,bkd->bqd"}> : () -> ()
    %cst_25 = arith.constant dense<0.000000e+00> : vector<2x8x8xf32>
    %77 = tpu.matmul %76, %61, %cst_25 {dimension_numbers = #tpu.dot_dimension_numbers<[2], [1], [1], [2], [0, 0, 0, 1, 1, 2], [0], [0]>} : vector<2x8x8xf32>, vector<2x8x8xf32>, vector<2x8x8xf32> -> vector<2x8x8xf32>
    "tpu.trace_stop"() : () -> ()
    %78 = vector.shape_cast %77 : vector<2x8x8xf32> to vector<16x8xf32>
    %79 = vector.extract_strided_slice %9 {offsets = [0, 24], sizes = [16, 8], strides = [1, 1]} : vector<16x96xf32> to vector<16x8xf32>
    %80 = vector.shape_cast %79 : vector<16x8xf32> to vector<2x8x8xf32>
    %81 = vector.extract_strided_slice %9 {offsets = [0, 56], sizes = [16, 8], strides = [1, 1]} : vector<16x96xf32> to vector<16x8xf32>
    %82 = vector.shape_cast %81 : vector<16x8xf32> to vector<2x8x8xf32>
    %83 = vector.extract_strided_slice %9 {offsets = [0, 88], sizes = [16, 8], strides = [1, 1]} : vector<16x96xf32> to vector<16x8xf32>
    %84 = vector.shape_cast %83 : vector<16x8xf32> to vector<2x8x8xf32>
    "tpu.trace_start"() <{level = 10 : i32, message = "bqd,bkd->bqk"}> : () -> ()
    %cst_26 = arith.constant dense<0.000000e+00> : vector<2x8x8xf32>
    %85 = tpu.matmul %80, %82, %cst_26 {dimension_numbers = #tpu.dot_dimension_numbers<[2], [2], [1], [1], [0, 0, 0, 1, 1, 1], [0], [0]>} : vector<2x8x8xf32>, vector<2x8x8xf32>, vector<2x8x8xf32> -> vector<2x8x8xf32>
    "tpu.trace_stop"() : () -> ()
    %cst_27 = arith.constant 0.353553385 : f32
    %86 = vector.broadcast %cst_27 : f32 to vector<2x8x8xf32>
    %87 = arith.mulf %85, %86 : vector<2x8x8xf32>
    %88 = vector.broadcast %0 : vector<2x1x8xf32> to vector<2x8x8xf32>
    %89 = arith.addf %87, %88 : vector<2x8x8xf32>
    %cst_28 = arith.constant dense<0xFF800000> : vector<2x8xf32>
    %90 = vector.multi_reduction <maximumf>, %89, %cst_28 [2] : vector<2x8x8xf32> to vector<2x8xf32>
    %91 = vector.shape_cast %90 : vector<2x8xf32> to vector<2x8x1xf32>
    %92 = vector.broadcast %91 : vector<2x8x1xf32> to vector<2x8x8xf32>
    %93 = arith.subf %89, %92 : vector<2x8x8xf32>
    %94 = math.exp %93 : vector<2x8x8xf32>
    %cst_29 = arith.constant dense<0.000000e+00> : vector<2x8xf32>
    %95 = vector.multi_reduction <add>, %94, %cst_29 [2] : vector<2x8x8xf32> to vector<2x8xf32>
    %96 = vector.shape_cast %95 : vector<2x8xf32> to vector<2x8x1xf32>
    %97 = tpu.reciprocal %96 {approx = true} : vector<2x8x1xf32> -> vector<2x8x1xf32>
    %98 = vector.broadcast %97 : vector<2x8x1xf32> to vector<2x8x8xf32>
    %99 = arith.mulf %94, %98 : vector<2x8x8xf32>
    "tpu.trace_start"() <{level = 10 : i32, message = "bqk,bkd->bqd"}> : () -> ()
    %cst_30 = arith.constant dense<0.000000e+00> : vector<2x8x8xf32>
    %100 = tpu.matmul %99, %84, %cst_30 {dimension_numbers = #tpu.dot_dimension_numbers<[2], [1], [1], [2], [0, 0, 0, 1, 1, 2], [0], [0]>} : vector<2x8x8xf32>, vector<2x8x8xf32>, vector<2x8x8xf32> -> vector<2x8x8xf32>
    "tpu.trace_stop"() : () -> ()
    %101 = vector.shape_cast %100 : vector<2x8x8xf32> to vector<16x8xf32>
    %102 = tpu.concatenate %32, %55, %78, %101 in 1 : vector<16x8xf32>, vector<16x8xf32>, vector<16x8xf32>, vector<16x8xf32> -> vector<16x32xf32>
    %c0_31 = arith.constant 0 : index
    %c0_32 = arith.constant 0 : index
    %c0_33 = arith.constant 0 : index
    %103 = vector.load %arg5[%c0_31, %c0_32, %c0_33] : memref<2x32x32xf32, #tpu.memory_space<vmem>>, vector<1x32x32xf32>
    %104 = vector.shape_cast %103 : vector<1x32x32xf32> to vector<32x32xf32>
    %cst_34 = arith.constant dense<0.000000e+00> : vector<16x32xf32>
    %105 = tpu.matmul %102, %104, %cst_34 {dimension_numbers = #tpu.dot_dimension_numbers<[1], [0], [0], [1], [0, 0, 1, 1], [], []>} : vector<16x32xf32>, vector<32x32xf32>, vector<16x32xf32> -> vector<16x32xf32>
    %c0_35 = arith.constant 0 : index
    %c0_36 = arith.constant 0 : index
    %c0_37 = arith.constant 0 : index
    %106 = vector.load %arg6[%c0_35, %c0_36, %c0_37] : memref<2x1x32xf32, #tpu.memory_space<vmem>>, vector<1x1x32xf32>
    %107 = vector.shape_cast %106 : vector<1x1x32xf32> to vector<1x32xf32>
    %108 = vector.broadcast %107 : vector<1x32xf32> to vector<16x32xf32>
    %109 = arith.addf %105, %108 : vector<16x32xf32>
    %110 = arith.addf %2, %109 : vector<16x32xf32>
    %c0_38 = arith.constant 0 : index
    %c0_39 = arith.constant 0 : index
    %c0_40 = arith.constant 0 : index
    %111 = vector.load %arg7[%c0_38, %c0_39, %c0_40] : memref<2x1x32xf32, #tpu.memory_space<vmem>>, vector<1x1x32xf32>
    %112 = vector.shape_cast %111 : vector<1x1x32xf32> to vector<1x32xf32>
    %c0_41 = arith.constant 0 : index
    %c0_42 = arith.constant 0 : index
    %c0_43 = arith.constant 0 : index
    %113 = vector.load %arg8[%c0_41, %c0_42, %c0_43] : memref<2x1x32xf32, #tpu.memory_space<vmem>>, vector<1x1x32xf32>
    %114 = vector.shape_cast %113 : vector<1x1x32xf32> to vector<1x32xf32>
    %cst_44 = arith.constant dense<0.000000e+00> : vector<16xf32>
    %115 = vector.multi_reduction <add>, %110, %cst_44 [1] : vector<16x32xf32> to vector<16xf32>
    %116 = vector.shape_cast %115 : vector<16xf32> to vector<16x1xf32>
    %cst_45 = arith.constant 3.200000e+01 : f32
    %117 = vector.broadcast %cst_45 : f32 to vector<16x1xf32>
    %118 = arith.divf %116, %117 : vector<16x1xf32>
    %119 = vector.broadcast %118 : vector<16x1xf32> to vector<16x32xf32>
    %120 = arith.subf %110, %119 : vector<16x32xf32>
    %121 = arith.mulf %120, %120 : vector<16x32xf32>
    %cst_46 = arith.constant dense<0.000000e+00> : vector<16xf32>
    %122 = vector.multi_reduction <add>, %121, %cst_46 [1] : vector<16x32xf32> to vector<16xf32>
    %123 = vector.shape_cast %122 : vector<16xf32> to vector<16x1xf32>
    %cst_47 = arith.constant 3.200000e+01 : f32
    %124 = vector.broadcast %cst_47 : f32 to vector<16x1xf32>
    %125 = arith.divf %123, %124 : vector<16x1xf32>
    %126 = vector.broadcast %118 : vector<16x1xf32> to vector<16x32xf32>
    %127 = arith.subf %110, %126 : vector<16x32xf32>
    %cst_48 = arith.constant 9.99999996E-13 : f32
    %128 = vector.broadcast %cst_48 : f32 to vector<16x1xf32>
    %129 = arith.addf %125, %128 : vector<16x1xf32>
    %130 = math.rsqrt %129 : vector<16x1xf32>
    %131 = vector.broadcast %130 : vector<16x1xf32> to vector<16x32xf32>
    %132 = arith.mulf %127, %131 : vector<16x32xf32>
    %133 = vector.broadcast %112 : vector<1x32xf32> to vector<16x32xf32>
    %134 = arith.mulf %132, %133 : vector<16x32xf32>
    %135 = vector.broadcast %114 : vector<1x32xf32> to vector<16x32xf32>
    %136 = arith.addf %134, %135 : vector<16x32xf32>
    %c0_49 = arith.constant 0 : index
    %c0_50 = arith.constant 0 : index
    %c0_51 = arith.constant 0 : index
    %137 = vector.load %arg9[%c0_49, %c0_50, %c0_51] : memref<2x32x64xf32, #tpu.memory_space<vmem>>, vector<1x32x64xf32>
    %138 = vector.shape_cast %137 : vector<1x32x64xf32> to vector<32x64xf32>
    %cst_52 = arith.constant dense<0.000000e+00> : vector<16x64xf32>
    %139 = tpu.matmul %136, %138, %cst_52 {dimension_numbers = #tpu.dot_dimension_numbers<[1], [0], [0], [1], [0, 0, 1, 1], [], []>} : vector<16x32xf32>, vector<32x64xf32>, vector<16x64xf32> -> vector<16x64xf32>
    %c0_53 = arith.constant 0 : index
    %c0_54 = arith.constant 0 : index
    %c0_55 = arith.constant 0 : index
    %140 = vector.load %arg10[%c0_53, %c0_54, %c0_55] : memref<2x1x64xf32, #tpu.memory_space<vmem>>, vector<1x1x64xf32>
    %141 = vector.shape_cast %140 : vector<1x1x64xf32> to vector<1x64xf32>
    %142 = vector.broadcast %141 : vector<1x64xf32> to vector<16x64xf32>
    %143 = arith.addf %139, %142 : vector<16x64xf32>
    %cst_56 = arith.constant 5.000000e-01 : f32
    %144 = vector.broadcast %cst_56 : f32 to vector<16x64xf32>
    %145 = arith.mulf %144, %143 : vector<16x64xf32>
    %cst_57 = arith.constant 0.636619746 : f32
    %146 = math.sqrt %cst_57 : f32
    %cst_58 = arith.constant 4.471500e-02 : f32
    %147 = vector.broadcast %cst_58 : f32 to vector<16x64xf32>
    %148 = arith.mulf %147, %143 : vector<16x64xf32>
    %149 = arith.mulf %148, %143 : vector<16x64xf32>
    %150 = arith.mulf %149, %143 : vector<16x64xf32>
    %151 = arith.addf %143, %150 : vector<16x64xf32>
    %152 = vector.broadcast %146 : f32 to vector<16x64xf32>
    %153 = arith.mulf %152, %151 : vector<16x64xf32>
    %154 = math.tanh %153 : vector<16x64xf32>
    %cst_59 = arith.constant 1.000000e+00 : f32
    %155 = vector.broadcast %cst_59 : f32 to vector<16x64xf32>
    %156 = arith.addf %155, %154 : vector<16x64xf32>
    %157 = arith.mulf %145, %156 : vector<16x64xf32>
    %c0_60 = arith.constant 0 : index
    %c0_61 = arith.constant 0 : index
    %c0_62 = arith.constant 0 : index
    %158 = vector.load %arg11[%c0_60, %c0_61, %c0_62] : memref<2x64x32xf32, #tpu.memory_space<vmem>>, vector<1x64x32xf32>
    %159 = vector.shape_cast %158 : vector<1x64x32xf32> to vector<64x32xf32>
    %cst_63 = arith.constant dense<0.000000e+00> : vector<16x32xf32>
    %160 = tpu.matmul %157, %159, %cst_63 {dimension_numbers = #tpu.dot_dimension_numbers<[1], [0], [0], [1], [0, 0, 1, 1], [], []>} : vector<16x64xf32>, vector<64x32xf32>, vector<16x32xf32> -> vector<16x32xf32>
    %c0_64 = arith.constant 0 : index
    %c0_65 = arith.constant 0 : index
    %c0_66 = arith.constant 0 : index
    %161 = vector.load %arg12[%c0_64, %c0_65, %c0_66] : memref<2x1x32xf32, #tpu.memory_space<vmem>>, vector<1x1x32xf32>
    %162 = vector.shape_cast %161 : vector<1x1x32xf32> to vector<1x32xf32>
    %163 = vector.broadcast %162 : vector<1x32xf32> to vector<16x32xf32>
    %164 = arith.addf %160, %163 : vector<16x32xf32>
    %165 = arith.addf %164, %136 : vector<16x32xf32>
    %c0_67 = arith.constant 0 : index
    %c0_68 = arith.constant 0 : index
    %c0_69 = arith.constant 0 : index
    %166 = vector.load %arg17[%c0_67, %c0_68, %c0_69] : memref<2x1x32xf32, #tpu.memory_space<vmem>>, vector<1x1x32xf32>
    %167 = vector.shape_cast %166 : vector<1x1x32xf32> to vector<1x32xf32>
    %c0_70 = arith.constant 0 : index
    %c0_71 = arith.constant 0 : index
    %c0_72 = arith.constant 0 : index
    %168 = vector.load %arg18[%c0_70, %c0_71, %c0_72] : memref<2x1x32xf32, #tpu.memory_space<vmem>>, vector<1x1x32xf32>
    %169 = vector.shape_cast %168 : vector<1x1x32xf32> to vector<1x32xf32>
    %cst_73 = arith.constant dense<0.000000e+00> : vector<16xf32>
    %170 = vector.multi_reduction <add>, %165, %cst_73 [1] : vector<16x32xf32> to vector<16xf32>
    %171 = vector.shape_cast %170 : vector<16xf32> to vector<16x1xf32>
    %cst_74 = arith.constant 3.200000e+01 : f32
    %172 = vector.broadcast %cst_74 : f32 to vector<16x1xf32>
    %173 = arith.divf %171, %172 : vector<16x1xf32>
    %174 = vector.broadcast %173 : vector<16x1xf32> to vector<16x32xf32>
    %175 = arith.subf %165, %174 : vector<16x32xf32>
    %176 = arith.mulf %175, %175 : vector<16x32xf32>
    %cst_75 = arith.constant dense<0.000000e+00> : vector<16xf32>
    %177 = vector.multi_reduction <add>, %176, %cst_75 [1] : vector<16x32xf32> to vector<16xf32>
    %178 = vector.shape_cast %177 : vector<16xf32> to vector<16x1xf32>
    %cst_76 = arith.constant 3.200000e+01 : f32
    %179 = vector.broadcast %cst_76 : f32 to vector<16x1xf32>
    %180 = arith.divf %178, %179 : vector<16x1xf32>
    %181 = vector.broadcast %173 : vector<16x1xf32> to vector<16x32xf32>
    %182 = arith.subf %165, %181 : vector<16x32xf32>
    %cst_77 = arith.constant 9.99999996E-13 : f32
    %183 = vector.broadcast %cst_77 : f32 to vector<16x1xf32>
    %184 = arith.addf %180, %183 : vector<16x1xf32>
    %185 = math.rsqrt %184 : vector<16x1xf32>
    %186 = vector.broadcast %185 : vector<16x1xf32> to vector<16x32xf32>
    %187 = arith.mulf %182, %186 : vector<16x32xf32>
    %188 = vector.broadcast %167 : vector<1x32xf32> to vector<16x32xf32>
    %189 = arith.mulf %187, %188 : vector<16x32xf32>
    %190 = vector.broadcast %169 : vector<1x32xf32> to vector<16x32xf32>
    %191 = arith.addf %189, %190 : vector<16x32xf32>
    %c1 = arith.constant 1 : index
    %c0_78 = arith.constant 0 : index
    %c0_79 = arith.constant 0 : index
    %192 = vector.load %arg3[%c1, %c0_78, %c0_79] : memref<2x32x96xf32, #tpu.memory_space<vmem>>, vector<1x32x96xf32>
    %193 = vector.shape_cast %192 : vector<1x32x96xf32> to vector<32x96xf32>
    %cst_80 = arith.constant dense<0.000000e+00> : vector<16x96xf32>
    %194 = tpu.matmul %191, %193, %cst_80 {dimension_numbers = #tpu.dot_dimension_numbers<[1], [0], [0], [1], [0, 0, 1, 1], [], []>} : vector<16x32xf32>, vector<32x96xf32>, vector<16x96xf32> -> vector<16x96xf32>
    %c1_81 = arith.constant 1 : index
    %c0_82 = arith.constant 0 : index
    %c0_83 = arith.constant 0 : index
    %195 = vector.load %arg4[%c1_81, %c0_82, %c0_83] : memref<2x1x96xf32, #tpu.memory_space<vmem>>, vector<1x1x96xf32>
    %196 = vector.shape_cast %195 : vector<1x1x96xf32> to vector<1x96xf32>
    %197 = vector.broadcast %196 : vector<1x96xf32> to vector<16x96xf32>
    %198 = arith.addf %194, %197 : vector<16x96xf32>
    %199 = vector.extract_strided_slice %198 {offsets = [0, 0], sizes = [16, 8], strides = [1, 1]} : vector<16x96xf32> to vector<16x8xf32>
    %200 = vector.shape_cast %199 : vector<16x8xf32> to vector<2x8x8xf32>
    %201 = vector.extract_strided_slice %198 {offsets = [0, 32], sizes = [16, 8], strides = [1, 1]} : vector<16x96xf32> to vector<16x8xf32>
    %202 = vector.shape_cast %201 : vector<16x8xf32> to vector<2x8x8xf32>
    %203 = vector.extract_strided_slice %198 {offsets = [0, 64], sizes = [16, 8], strides = [1, 1]} : vector<16x96xf32> to vector<16x8xf32>
    %204 = vector.shape_cast %203 : vector<16x8xf32> to vector<2x8x8xf32>
    "tpu.trace_start"() <{level = 10 : i32, message = "bqd,bkd->bqk"}> : () -> ()
    %cst_84 = arith.constant dense<0.000000e+00> : vector<2x8x8xf32>
    %205 = tpu.matmul %200, %202, %cst_84 {dimension_numbers = #tpu.dot_dimension_numbers<[2], [2], [1], [1], [0, 0, 0, 1, 1, 1], [0], [0]>} : vector<2x8x8xf32>, vector<2x8x8xf32>, vector<2x8x8xf32> -> vector<2x8x8xf32>
    "tpu.trace_stop"() : () -> ()
    %cst_85 = arith.constant 0.353553385 : f32
    %206 = vector.broadcast %cst_85 : f32 to vector<2x8x8xf32>
    %207 = arith.mulf %205, %206 : vector<2x8x8xf32>
    %208 = vector.broadcast %0 : vector<2x1x8xf32> to vector<2x8x8xf32>
    %209 = arith.addf %207, %208 : vector<2x8x8xf32>
    %cst_86 = arith.constant dense<0xFF800000> : vector<2x8xf32>
    %210 = vector.multi_reduction <maximumf>, %209, %cst_86 [2] : vector<2x8x8xf32> to vector<2x8xf32>
    %211 = vector.shape_cast %210 : vector<2x8xf32> to vector<2x8x1xf32>
    %212 = vector.broadcast %211 : vector<2x8x1xf32> to vector<2x8x8xf32>
    %213 = arith.subf %209, %212 : vector<2x8x8xf32>
    %214 = math.exp %213 : vector<2x8x8xf32>
    %cst_87 = arith.constant dense<0.000000e+00> : vector<2x8xf32>
    %215 = vector.multi_reduction <add>, %214, %cst_87 [2] : vector<2x8x8xf32> to vector<2x8xf32>
    %216 = vector.shape_cast %215 : vector<2x8xf32> to vector<2x8x1xf32>
    %217 = tpu.reciprocal %216 {approx = true} : vector<2x8x1xf32> -> vector<2x8x1xf32>
    %218 = vector.broadcast %217 : vector<2x8x1xf32> to vector<2x8x8xf32>
    %219 = arith.mulf %214, %218 : vector<2x8x8xf32>
    "tpu.trace_start"() <{level = 10 : i32, message = "bqk,bkd->bqd"}> : () -> ()
    %cst_88 = arith.constant dense<0.000000e+00> : vector<2x8x8xf32>
    %220 = tpu.matmul %219, %204, %cst_88 {dimension_numbers = #tpu.dot_dimension_numbers<[2], [1], [1], [2], [0, 0, 0, 1, 1, 2], [0], [0]>} : vector<2x8x8xf32>, vector<2x8x8xf32>, vector<2x8x8xf32> -> vector<2x8x8xf32>
    "tpu.trace_stop"() : () -> ()
    %221 = vector.shape_cast %220 : vector<2x8x8xf32> to vector<16x8xf32>
    %222 = vector.extract_strided_slice %198 {offsets = [0, 8], sizes = [16, 8], strides = [1, 1]} : vector<16x96xf32> to vector<16x8xf32>
    %223 = vector.shape_cast %222 : vector<16x8xf32> to vector<2x8x8xf32>
    %224 = vector.extract_strided_slice %198 {offsets = [0, 40], sizes = [16, 8], strides = [1, 1]} : vector<16x96xf32> to vector<16x8xf32>
    %225 = vector.shape_cast %224 : vector<16x8xf32> to vector<2x8x8xf32>
    %226 = vector.extract_strided_slice %198 {offsets = [0, 72], sizes = [16, 8], strides = [1, 1]} : vector<16x96xf32> to vector<16x8xf32>
    %227 = vector.shape_cast %226 : vector<16x8xf32> to vector<2x8x8xf32>
    "tpu.trace_start"() <{level = 10 : i32, message = "bqd,bkd->bqk"}> : () -> ()
    %cst_89 = arith.constant dense<0.000000e+00> : vector<2x8x8xf32>
    %228 = tpu.matmul %223, %225, %cst_89 {dimension_numbers = #tpu.dot_dimension_numbers<[2], [2], [1], [1], [0, 0, 0, 1, 1, 1], [0], [0]>} : vector<2x8x8xf32>, vector<2x8x8xf32>, vector<2x8x8xf32> -> vector<2x8x8xf32>
    "tpu.trace_stop"() : () -> ()
    %cst_90 = arith.constant 0.353553385 : f32
    %229 = vector.broadcast %cst_90 : f32 to vector<2x8x8xf32>
    %230 = arith.mulf %228, %229 : vector<2x8x8xf32>
    %231 = vector.broadcast %0 : vector<2x1x8xf32> to vector<2x8x8xf32>
    %232 = arith.addf %230, %231 : vector<2x8x8xf32>
    %cst_91 = arith.constant dense<0xFF800000> : vector<2x8xf32>
    %233 = vector.multi_reduction <maximumf>, %232, %cst_91 [2] : vector<2x8x8xf32> to vector<2x8xf32>
    %234 = vector.shape_cast %233 : vector<2x8xf32> to vector<2x8x1xf32>
    %235 = vector.broadcast %234 : vector<2x8x1xf32> to vector<2x8x8xf32>
    %236 = arith.subf %232, %235 : vector<2x8x8xf32>
    %237 = math.exp %236 : vector<2x8x8xf32>
    %cst_92 = arith.constant dense<0.000000e+00> : vector<2x8xf32>
    %238 = vector.multi_reduction <add>, %237, %cst_92 [2] : vector<2x8x8xf32> to vector<2x8xf32>
    %239 = vector.shape_cast %238 : vector<2x8xf32> to vector<2x8x1xf32>
    %240 = tpu.reciprocal %239 {approx = true} : vector<2x8x1xf32> -> vector<2x8x1xf32>
    %241 = vector.broadcast %240 : vector<2x8x1xf32> to vector<2x8x8xf32>
    %242 = arith.mulf %237, %241 : vector<2x8x8xf32>
    "tpu.trace_start"() <{level = 10 : i32, message = "bqk,bkd->bqd"}> : () -> ()
    %cst_93 = arith.constant dense<0.000000e+00> : vector<2x8x8xf32>
    %243 = tpu.matmul %242, %227, %cst_93 {dimension_numbers = #tpu.dot_dimension_numbers<[2], [1], [1], [2], [0, 0, 0, 1, 1, 2], [0], [0]>} : vector<2x8x8xf32>, vector<2x8x8xf32>, vector<2x8x8xf32> -> vector<2x8x8xf32>
    "tpu.trace_stop"() : () -> ()
    %244 = vector.shape_cast %243 : vector<2x8x8xf32> to vector<16x8xf32>
    %245 = vector.extract_strided_slice %198 {offsets = [0, 16], sizes = [16, 8], strides = [1, 1]} : vector<16x96xf32> to vector<16x8xf32>
    %246 = vector.shape_cast %245 : vector<16x8xf32> to vector<2x8x8xf32>
    %247 = vector.extract_strided_slice %198 {offsets = [0, 48], sizes = [16, 8], strides = [1, 1]} : vector<16x96xf32> to vector<16x8xf32>
    %248 = vector.shape_cast %247 : vector<16x8xf32> to vector<2x8x8xf32>
    %249 = vector.extract_strided_slice %198 {offsets = [0, 80], sizes = [16, 8], strides = [1, 1]} : vector<16x96xf32> to vector<16x8xf32>
    %250 = vector.shape_cast %249 : vector<16x8xf32> to vector<2x8x8xf32>
    "tpu.trace_start"() <{level = 10 : i32, message = "bqd,bkd->bqk"}> : () -> ()
    %cst_94 = arith.constant dense<0.000000e+00> : vector<2x8x8xf32>
    %251 = tpu.matmul %246, %248, %cst_94 {dimension_numbers = #tpu.dot_dimension_numbers<[2], [2], [1], [1], [0, 0, 0, 1, 1, 1], [0], [0]>} : vector<2x8x8xf32>, vector<2x8x8xf32>, vector<2x8x8xf32> -> vector<2x8x8xf32>
    "tpu.trace_stop"() : () -> ()
    %cst_95 = arith.constant 0.353553385 : f32
    %252 = vector.broadcast %cst_95 : f32 to vector<2x8x8xf32>
    %253 = arith.mulf %251, %252 : vector<2x8x8xf32>
    %254 = vector.broadcast %0 : vector<2x1x8xf32> to vector<2x8x8xf32>
    %255 = arith.addf %253, %254 : vector<2x8x8xf32>
    %cst_96 = arith.constant dense<0xFF800000> : vector<2x8xf32>
    %256 = vector.multi_reduction <maximumf>, %255, %cst_96 [2] : vector<2x8x8xf32> to vector<2x8xf32>
    %257 = vector.shape_cast %256 : vector<2x8xf32> to vector<2x8x1xf32>
    %258 = vector.broadcast %257 : vector<2x8x1xf32> to vector<2x8x8xf32>
    %259 = arith.subf %255, %258 : vector<2x8x8xf32>
    %260 = math.exp %259 : vector<2x8x8xf32>
    %cst_97 = arith.constant dense<0.000000e+00> : vector<2x8xf32>
    %261 = vector.multi_reduction <add>, %260, %cst_97 [2] : vector<2x8x8xf32> to vector<2x8xf32>
    %262 = vector.shape_cast %261 : vector<2x8xf32> to vector<2x8x1xf32>
    %263 = tpu.reciprocal %262 {approx = true} : vector<2x8x1xf32> -> vector<2x8x1xf32>
    %264 = vector.broadcast %263 : vector<2x8x1xf32> to vector<2x8x8xf32>
    %265 = arith.mulf %260, %264 : vector<2x8x8xf32>
    "tpu.trace_start"() <{level = 10 : i32, message = "bqk,bkd->bqd"}> : () -> ()
    %cst_98 = arith.constant dense<0.000000e+00> : vector<2x8x8xf32>
    %266 = tpu.matmul %265, %250, %cst_98 {dimension_numbers = #tpu.dot_dimension_numbers<[2], [1], [1], [2], [0, 0, 0, 1, 1, 2], [0], [0]>} : vector<2x8x8xf32>, vector<2x8x8xf32>, vector<2x8x8xf32> -> vector<2x8x8xf32>
    "tpu.trace_stop"() : () -> ()
    %267 = vector.shape_cast %266 : vector<2x8x8xf32> to vector<16x8xf32>
    %268 = vector.extract_strided_slice %198 {offsets = [0, 24], sizes = [16, 8], strides = [1, 1]} : vector<16x96xf32> to vector<16x8xf32>
    %269 = vector.shape_cast %268 : vector<16x8xf32> to vector<2x8x8xf32>
    %270 = vector.extract_strided_slice %198 {offsets = [0, 56], sizes = [16, 8], strides = [1, 1]} : vector<16x96xf32> to vector<16x8xf32>
    %271 = vector.shape_cast %270 : vector<16x8xf32> to vector<2x8x8xf32>
    %272 = vector.extract_strided_slice %198 {offsets = [0, 88], sizes = [16, 8], strides = [1, 1]} : vector<16x96xf32> to vector<16x8xf32>
    %273 = vector.shape_cast %272 : vector<16x8xf32> to vector<2x8x8xf32>
    "tpu.trace_start"() <{level = 10 : i32, message = "bqd,bkd->bqk"}> : () -> ()
    %cst_99 = arith.constant dense<0.000000e+00> : vector<2x8x8xf32>
    %274 = tpu.matmul %269, %271, %cst_99 {dimension_numbers = #tpu.dot_dimension_numbers<[2], [2], [1], [1], [0, 0, 0, 1, 1, 1], [0], [0]>} : vector<2x8x8xf32>, vector<2x8x8xf32>, vector<2x8x8xf32> -> vector<2x8x8xf32>
    "tpu.trace_stop"() : () -> ()
    %cst_100 = arith.constant 0.353553385 : f32
    %275 = vector.broadcast %cst_100 : f32 to vector<2x8x8xf32>
    %276 = arith.mulf %274, %275 : vector<2x8x8xf32>
    %277 = vector.broadcast %0 : vector<2x1x8xf32> to vector<2x8x8xf32>
    %278 = arith.addf %276, %277 : vector<2x8x8xf32>
    %cst_101 = arith.constant dense<0xFF800000> : vector<2x8xf32>
    %279 = vector.multi_reduction <maximumf>, %278, %cst_101 [2] : vector<2x8x8xf32> to vector<2x8xf32>
    %280 = vector.shape_cast %279 : vector<2x8xf32> to vector<2x8x1xf32>
    %281 = vector.broadcast %280 : vector<2x8x1xf32> to vector<2x8x8xf32>
    %282 = arith.subf %278, %281 : vector<2x8x8xf32>
    %283 = math.exp %282 : vector<2x8x8xf32>
    %cst_102 = arith.constant dense<0.000000e+00> : vector<2x8xf32>
    %284 = vector.multi_reduction <add>, %283, %cst_102 [2] : vector<2x8x8xf32> to vector<2x8xf32>
    %285 = vector.shape_cast %284 : vector<2x8xf32> to vector<2x8x1xf32>
    %286 = tpu.reciprocal %285 {approx = true} : vector<2x8x1xf32> -> vector<2x8x1xf32>
    %287 = vector.broadcast %286 : vector<2x8x1xf32> to vector<2x8x8xf32>
    %288 = arith.mulf %283, %287 : vector<2x8x8xf32>
    "tpu.trace_start"() <{level = 10 : i32, message = "bqk,bkd->bqd"}> : () -> ()
    %cst_103 = arith.constant dense<0.000000e+00> : vector<2x8x8xf32>
    %289 = tpu.matmul %288, %273, %cst_103 {dimension_numbers = #tpu.dot_dimension_numbers<[2], [1], [1], [2], [0, 0, 0, 1, 1, 2], [0], [0]>} : vector<2x8x8xf32>, vector<2x8x8xf32>, vector<2x8x8xf32> -> vector<2x8x8xf32>
    "tpu.trace_stop"() : () -> ()
    %290 = vector.shape_cast %289 : vector<2x8x8xf32> to vector<16x8xf32>
    %291 = tpu.concatenate %221, %244, %267, %290 in 1 : vector<16x8xf32>, vector<16x8xf32>, vector<16x8xf32>, vector<16x8xf32> -> vector<16x32xf32>
    %c1_104 = arith.constant 1 : index
    %c0_105 = arith.constant 0 : index
    %c0_106 = arith.constant 0 : index
    %292 = vector.load %arg5[%c1_104, %c0_105, %c0_106] : memref<2x32x32xf32, #tpu.memory_space<vmem>>, vector<1x32x32xf32>
    %293 = vector.shape_cast %292 : vector<1x32x32xf32> to vector<32x32xf32>
    %cst_107 = arith.constant dense<0.000000e+00> : vector<16x32xf32>
    %294 = tpu.matmul %291, %293, %cst_107 {dimension_numbers = #tpu.dot_dimension_numbers<[1], [0], [0], [1], [0, 0, 1, 1], [], []>} : vector<16x32xf32>, vector<32x32xf32>, vector<16x32xf32> -> vector<16x32xf32>
    %c1_108 = arith.constant 1 : index
    %c0_109 = arith.constant 0 : index
    %c0_110 = arith.constant 0 : index
    %295 = vector.load %arg6[%c1_108, %c0_109, %c0_110] : memref<2x1x32xf32, #tpu.memory_space<vmem>>, vector<1x1x32xf32>
    %296 = vector.shape_cast %295 : vector<1x1x32xf32> to vector<1x32xf32>
    %297 = vector.broadcast %296 : vector<1x32xf32> to vector<16x32xf32>
    %298 = arith.addf %294, %297 : vector<16x32xf32>
    %299 = arith.addf %191, %298 : vector<16x32xf32>
    %c1_111 = arith.constant 1 : index
    %c0_112 = arith.constant 0 : index
    %c0_113 = arith.constant 0 : index
    %300 = vector.load %arg7[%c1_111, %c0_112, %c0_113] : memref<2x1x32xf32, #tpu.memory_space<vmem>>, vector<1x1x32xf32>
    %301 = vector.shape_cast %300 : vector<1x1x32xf32> to vector<1x32xf32>
    %c1_114 = arith.constant 1 : index
    %c0_115 = arith.constant 0 : index
    %c0_116 = arith.constant 0 : index
    %302 = vector.load %arg8[%c1_114, %c0_115, %c0_116] : memref<2x1x32xf32, #tpu.memory_space<vmem>>, vector<1x1x32xf32>
    %303 = vector.shape_cast %302 : vector<1x1x32xf32> to vector<1x32xf32>
    %cst_117 = arith.constant dense<0.000000e+00> : vector<16xf32>
    %304 = vector.multi_reduction <add>, %299, %cst_117 [1] : vector<16x32xf32> to vector<16xf32>
    %305 = vector.shape_cast %304 : vector<16xf32> to vector<16x1xf32>
    %cst_118 = arith.constant 3.200000e+01 : f32
    %306 = vector.broadcast %cst_118 : f32 to vector<16x1xf32>
    %307 = arith.divf %305, %306 : vector<16x1xf32>
    %308 = vector.broadcast %307 : vector<16x1xf32> to vector<16x32xf32>
    %309 = arith.subf %299, %308 : vector<16x32xf32>
    %310 = arith.mulf %309, %309 : vector<16x32xf32>
    %cst_119 = arith.constant dense<0.000000e+00> : vector<16xf32>
    %311 = vector.multi_reduction <add>, %310, %cst_119 [1] : vector<16x32xf32> to vector<16xf32>
    %312 = vector.shape_cast %311 : vector<16xf32> to vector<16x1xf32>
    %cst_120 = arith.constant 3.200000e+01 : f32
    %313 = vector.broadcast %cst_120 : f32 to vector<16x1xf32>
    %314 = arith.divf %312, %313 : vector<16x1xf32>
    %315 = vector.broadcast %307 : vector<16x1xf32> to vector<16x32xf32>
    %316 = arith.subf %299, %315 : vector<16x32xf32>
    %cst_121 = arith.constant 9.99999996E-13 : f32
    %317 = vector.broadcast %cst_121 : f32 to vector<16x1xf32>
    %318 = arith.addf %314, %317 : vector<16x1xf32>
    %319 = math.rsqrt %318 : vector<16x1xf32>
    %320 = vector.broadcast %319 : vector<16x1xf32> to vector<16x32xf32>
    %321 = arith.mulf %316, %320 : vector<16x32xf32>
    %322 = vector.broadcast %301 : vector<1x32xf32> to vector<16x32xf32>
    %323 = arith.mulf %321, %322 : vector<16x32xf32>
    %324 = vector.broadcast %303 : vector<1x32xf32> to vector<16x32xf32>
    %325 = arith.addf %323, %324 : vector<16x32xf32>
    %c1_122 = arith.constant 1 : index
    %c0_123 = arith.constant 0 : index
    %c0_124 = arith.constant 0 : index
    %326 = vector.load %arg9[%c1_122, %c0_123, %c0_124] : memref<2x32x64xf32, #tpu.memory_space<vmem>>, vector<1x32x64xf32>
    %327 = vector.shape_cast %326 : vector<1x32x64xf32> to vector<32x64xf32>
    %cst_125 = arith.constant dense<0.000000e+00> : vector<16x64xf32>
    %328 = tpu.matmul %325, %327, %cst_125 {dimension_numbers = #tpu.dot_dimension_numbers<[1], [0], [0], [1], [0, 0, 1, 1], [], []>} : vector<16x32xf32>, vector<32x64xf32>, vector<16x64xf32> -> vector<16x64xf32>
    %c1_126 = arith.constant 1 : index
    %c0_127 = arith.constant 0 : index
    %c0_128 = arith.constant 0 : index
    %329 = vector.load %arg10[%c1_126, %c0_127, %c0_128] : memref<2x1x64xf32, #tpu.memory_space<vmem>>, vector<1x1x64xf32>
    %330 = vector.shape_cast %329 : vector<1x1x64xf32> to vector<1x64xf32>
    %331 = vector.broadcast %330 : vector<1x64xf32> to vector<16x64xf32>
    %332 = arith.addf %328, %331 : vector<16x64xf32>
    %cst_129 = arith.constant 5.000000e-01 : f32
    %333 = vector.broadcast %cst_129 : f32 to vector<16x64xf32>
    %334 = arith.mulf %333, %332 : vector<16x64xf32>
    %cst_130 = arith.constant 0.636619746 : f32
    %335 = math.sqrt %cst_130 : f32
    %cst_131 = arith.constant 4.471500e-02 : f32
    %336 = vector.broadcast %cst_131 : f32 to vector<16x64xf32>
    %337 = arith.mulf %336, %332 : vector<16x64xf32>
    %338 = arith.mulf %337, %332 : vector<16x64xf32>
    %339 = arith.mulf %338, %332 : vector<16x64xf32>
    %340 = arith.addf %332, %339 : vector<16x64xf32>
    %341 = vector.broadcast %335 : f32 to vector<16x64xf32>
    %342 = arith.mulf %341, %340 : vector<16x64xf32>
    %343 = math.tanh %342 : vector<16x64xf32>
    %cst_132 = arith.constant 1.000000e+00 : f32
    %344 = vector.broadcast %cst_132 : f32 to vector<16x64xf32>
    %345 = arith.addf %344, %343 : vector<16x64xf32>
    %346 = arith.mulf %334, %345 : vector<16x64xf32>
    %c1_133 = arith.constant 1 : index
    %c0_134 = arith.constant 0 : index
    %c0_135 = arith.constant 0 : index
    %347 = vector.load %arg11[%c1_133, %c0_134, %c0_135] : memref<2x64x32xf32, #tpu.memory_space<vmem>>, vector<1x64x32xf32>
    %348 = vector.shape_cast %347 : vector<1x64x32xf32> to vector<64x32xf32>
    %cst_136 = arith.constant dense<0.000000e+00> : vector<16x32xf32>
    %349 = tpu.matmul %346, %348, %cst_136 {dimension_numbers = #tpu.dot_dimension_numbers<[1], [0], [0], [1], [0, 0, 1, 1], [], []>} : vector<16x64xf32>, vector<64x32xf32>, vector<16x32xf32> -> vector<16x32xf32>
    %c1_137 = arith.constant 1 : index
    %c0_138 = arith.constant 0 : index
    %c0_139 = arith.constant 0 : index
    %350 = vector.load %arg12[%c1_137, %c0_138, %c0_139] : memref<2x1x32xf32, #tpu.memory_space<vmem>>, vector<1x1x32xf32>
    %351 = vector.shape_cast %350 : vector<1x1x32xf32> to vector<1x32xf32>
    %352 = vector.broadcast %351 : vector<1x32xf32> to vector<16x32xf32>
    %353 = arith.addf %349, %352 : vector<16x32xf32>
    %c1_140 = arith.constant 1 : index
    %c0_141 = arith.constant 0 : index
    %c0_142 = arith.constant 0 : index
    %354 = vector.load %arg13[%c1_140, %c0_141, %c0_142] : memref<2x32x256xf32, #tpu.memory_space<vmem>>, vector<1x32x256xf32>
    %355 = vector.shape_cast %354 : vector<1x32x256xf32> to vector<32x256xf32>
    %cst_143 = arith.constant dense<0.000000e+00> : vector<16x256xf32>
    %356 = tpu.matmul %325, %355, %cst_143 {dimension_numbers = #tpu.dot_dimension_numbers<[1], [0], [0], [1], [0, 0, 1, 1], [], []>} : vector<16x32xf32>, vector<32x256xf32>, vector<16x256xf32> -> vector<16x256xf32>
    %c1_144 = arith.constant 1 : index
    %c0_145 = arith.constant 0 : index
    %c0_146 = arith.constant 0 : index
    %357 = vector.load %arg14[%c1_144, %c0_145, %c0_146] : memref<2x1x256xf32, #tpu.memory_space<vmem>>, vector<1x1x256xf32>
    %358 = vector.shape_cast %357 : vector<1x1x256xf32> to vector<1x256xf32>
    %359 = vector.broadcast %358 : vector<1x256xf32> to vector<16x256xf32>
    %360 = arith.addf %356, %359 : vector<16x256xf32>
    %cst_147 = arith.constant 5.000000e-01 : f32
    %361 = vector.broadcast %cst_147 : f32 to vector<16x256xf32>
    %362 = arith.mulf %361, %360 : vector<16x256xf32>
    %cst_148 = arith.constant 0.636619746 : f32
    %363 = math.sqrt %cst_148 : f32
    %cst_149 = arith.constant 4.471500e-02 : f32
    %364 = vector.broadcast %cst_149 : f32 to vector<16x256xf32>
    %365 = arith.mulf %364, %360 : vector<16x256xf32>
    %366 = arith.mulf %365, %360 : vector<16x256xf32>
    %367 = arith.mulf %366, %360 : vector<16x256xf32>
    %368 = arith.addf %360, %367 : vector<16x256xf32>
    %369 = vector.broadcast %363 : f32 to vector<16x256xf32>
    %370 = arith.mulf %369, %368 : vector<16x256xf32>
    %371 = math.tanh %370 : vector<16x256xf32>
    %cst_150 = arith.constant 1.000000e+00 : f32
    %372 = vector.broadcast %cst_150 : f32 to vector<16x256xf32>
    %373 = arith.addf %372, %371 : vector<16x256xf32>
    %374 = arith.mulf %362, %373 : vector<16x256xf32>
    %c1_151 = arith.constant 1 : index
    %c0_152 = arith.constant 0 : index
    %c0_153 = arith.constant 0 : index
    %375 = vector.load %arg15[%c1_151, %c0_152, %c0_153] : memref<2x256x32xf32, #tpu.memory_space<vmem>>, vector<1x256x32xf32>
    %376 = vector.shape_cast %375 : vector<1x256x32xf32> to vector<256x32xf32>
    %cst_154 = arith.constant dense<0.000000e+00> : vector<16x32xf32>
    %377 = tpu.matmul %374, %376, %cst_154 {dimension_numbers = #tpu.dot_dimension_numbers<[1], [0], [0], [1], [0, 0, 1, 1], [], []>} : vector<16x256xf32>, vector<256x32xf32>, vector<16x32xf32> -> vector<16x32xf32>
    %c1_155 = arith.constant 1 : index
    %c0_156 = arith.constant 0 : index
    %c0_157 = arith.constant 0 : index
    %378 = vector.load %arg16[%c1_155, %c0_156, %c0_157] : memref<2x1x32xf32, #tpu.memory_space<vmem>>, vector<1x1x32xf32>
    %379 = vector.shape_cast %378 : vector<1x1x32xf32> to vector<1x32xf32>
    %380 = vector.broadcast %379 : vector<1x32xf32> to vector<16x32xf32>
    %381 = arith.addf %377, %380 : vector<16x32xf32>
    %382 = arith.addf %381, %353 : vector<16x32xf32>
    %383 = arith.addf %353, %325 : vector<16x32xf32>
    %c1_158 = arith.constant 1 : index
    %c0_159 = arith.constant 0 : index
    %c0_160 = arith.constant 0 : index
    %384 = vector.load %arg17[%c1_158, %c0_159, %c0_160] : memref<2x1x32xf32, #tpu.memory_space<vmem>>, vector<1x1x32xf32>
    %385 = vector.shape_cast %384 : vector<1x1x32xf32> to vector<1x32xf32>
    %c1_161 = arith.constant 1 : index
    %c0_162 = arith.constant 0 : index
    %c0_163 = arith.constant 0 : index
    %386 = vector.load %arg18[%c1_161, %c0_162, %c0_163] : memref<2x1x32xf32, #tpu.memory_space<vmem>>, vector<1x1x32xf32>
    %387 = vector.shape_cast %386 : vector<1x1x32xf32> to vector<1x32xf32>
    %cst_164 = arith.constant dense<0.000000e+00> : vector<16xf32>
    %388 = vector.multi_reduction <add>, %383, %cst_164 [1] : vector<16x32xf32> to vector<16xf32>
    %389 = vector.shape_cast %388 : vector<16xf32> to vector<16x1xf32>
    %cst_165 = arith.constant 3.200000e+01 : f32
    %390 = vector.broadcast %cst_165 : f32 to vector<16x1xf32>
    %391 = arith.divf %389, %390 : vector<16x1xf32>
    %392 = vector.broadcast %391 : vector<16x1xf32> to vector<16x32xf32>
    %393 = arith.subf %383, %392 : vector<16x32xf32>
    %394 = arith.mulf %393, %393 : vector<16x32xf32>
    %cst_166 = arith.constant dense<0.000000e+00> : vector<16xf32>
    %395 = vector.multi_reduction <add>, %394, %cst_166 [1] : vector<16x32xf32> to vector<16xf32>
    %396 = vector.shape_cast %395 : vector<16xf32> to vector<16x1xf32>
    %cst_167 = arith.constant 3.200000e+01 : f32
    %397 = vector.broadcast %cst_167 : f32 to vector<16x1xf32>
    %398 = arith.divf %396, %397 : vector<16x1xf32>
    %399 = vector.broadcast %391 : vector<16x1xf32> to vector<16x32xf32>
    %400 = arith.subf %383, %399 : vector<16x32xf32>
    %cst_168 = arith.constant 9.99999996E-13 : f32
    %401 = vector.broadcast %cst_168 : f32 to vector<16x1xf32>
    %402 = arith.addf %398, %401 : vector<16x1xf32>
    %403 = math.rsqrt %402 : vector<16x1xf32>
    %404 = vector.broadcast %403 : vector<16x1xf32> to vector<16x32xf32>
    %405 = arith.mulf %400, %404 : vector<16x32xf32>
    %406 = vector.broadcast %385 : vector<1x32xf32> to vector<16x32xf32>
    %407 = arith.mulf %405, %406 : vector<16x32xf32>
    %408 = vector.broadcast %387 : vector<1x32xf32> to vector<16x32xf32>
    %409 = arith.addf %407, %408 : vector<16x32xf32>
    %410 = arith.addf %382, %325 : vector<16x32xf32>
    %c1_169 = arith.constant 1 : index
    %c0_170 = arith.constant 0 : index
    %c0_171 = arith.constant 0 : index
    %411 = vector.load %arg19[%c1_169, %c0_170, %c0_171] : memref<2x1x32xf32, #tpu.memory_space<vmem>>, vector<1x1x32xf32>
    %412 = vector.shape_cast %411 : vector<1x1x32xf32> to vector<1x32xf32>
    %c1_172 = arith.constant 1 : index
    %c0_173 = arith.constant 0 : index
    %c0_174 = arith.constant 0 : index
    %413 = vector.load %arg20[%c1_172, %c0_173, %c0_174] : memref<2x1x32xf32, #tpu.memory_space<vmem>>, vector<1x1x32xf32>
    %414 = vector.shape_cast %413 : vector<1x1x32xf32> to vector<1x32xf32>
    %cst_175 = arith.constant dense<0.000000e+00> : vector<16xf32>
    %415 = vector.multi_reduction <add>, %410, %cst_175 [1] : vector<16x32xf32> to vector<16xf32>
    %416 = vector.shape_cast %415 : vector<16xf32> to vector<16x1xf32>
    %cst_176 = arith.constant 3.200000e+01 : f32
    %417 = vector.broadcast %cst_176 : f32 to vector<16x1xf32>
    %418 = arith.divf %416, %417 : vector<16x1xf32>
    %419 = vector.broadcast %418 : vector<16x1xf32> to vector<16x32xf32>
    %420 = arith.subf %410, %419 : vector<16x32xf32>
    %421 = arith.mulf %420, %420 : vector<16x32xf32>
    %cst_177 = arith.constant dense<0.000000e+00> : vector<16xf32>
    %422 = vector.multi_reduction <add>, %421, %cst_177 [1] : vector<16x32xf32> to vector<16xf32>
    %423 = vector.shape_cast %422 : vector<16xf32> to vector<16x1xf32>
    %cst_178 = arith.constant 3.200000e+01 : f32
    %424 = vector.broadcast %cst_178 : f32 to vector<16x1xf32>
    %425 = arith.divf %423, %424 : vector<16x1xf32>
    %426 = vector.broadcast %418 : vector<16x1xf32> to vector<16x32xf32>
    %427 = arith.subf %410, %426 : vector<16x32xf32>
    %cst_179 = arith.constant 9.99999996E-13 : f32
    %428 = vector.broadcast %cst_179 : f32 to vector<16x1xf32>
    %429 = arith.addf %425, %428 : vector<16x1xf32>
    %430 = math.rsqrt %429 : vector<16x1xf32>
    %431 = vector.broadcast %430 : vector<16x1xf32> to vector<16x32xf32>
    %432 = arith.mulf %427, %431 : vector<16x32xf32>
    %433 = vector.broadcast %412 : vector<1x32xf32> to vector<16x32xf32>
    %434 = arith.mulf %432, %433 : vector<16x32xf32>
    %435 = vector.broadcast %414 : vector<1x32xf32> to vector<16x32xf32>
    %436 = arith.addf %434, %435 : vector<16x32xf32>
    %437 = vector.shape_cast %409 : vector<16x32xf32> to vector<2x8x32xf32>
    %c0_180 = arith.constant 0 : index
    %c0_181 = arith.constant 0 : index
    %c0_182 = arith.constant 0 : index
    %c0_183 = arith.constant 0 : index
    %438 = vector.load %arg21[%c0_180, %c0_181, %c0_182, %c0_183] : memref<2x2x8x32xf32, #tpu.memory_space<vmem>>, vector<1x2x8x32xf32>
    %439 = vector.shape_cast %438 : vector<1x2x8x32xf32> to vector<2x8x32xf32>
    %440 = vector.shape_cast %437 : vector<2x8x32xf32> to vector<1x2x8x32xf32>
    tpu.vector_store %arg21[%c0_180, %c0_181, %c0_182, %c0_183], %440 {strides = array<i32>} : memref<2x2x8x32xf32, #tpu.memory_space<vmem>>, vector<1x2x8x32xf32>,
    %441 = vector.shape_cast %436 : vector<16x32xf32> to vector<2x8x32xf32>
    %c1_184 = arith.constant 1 : index
    %c0_185 = arith.constant 0 : index
    %c0_186 = arith.constant 0 : index
    %c0_187 = arith.constant 0 : index
    %442 = vector.load %arg21[%c1_184, %c0_185, %c0_186, %c0_187] : memref<2x2x8x32xf32, #tpu.memory_space<vmem>>, vector<1x2x8x32xf32>
    %443 = vector.shape_cast %442 : vector<1x2x8x32xf32> to vector<2x8x32xf32>
    %444 = vector.shape_cast %441 : vector<2x8x32xf32> to vector<1x2x8x32xf32>
    tpu.vector_store %arg21[%c1_184, %c0_185, %c0_186, %c0_187], %444 {strides = array<i32>} : memref<2x2x8x32xf32, #tpu.memory_space<vmem>>, vector<1x2x8x32xf32>,
    return
  }
  func.func @transform_0(%arg0: i32) -> (i32, i32, i32) {
    %c0_i32 = arith.constant 0 : i32
    %c0_i32_0 = arith.constant 0 : i32
    %c0_i32_1 = arith.constant 0 : i32
    %c0_i32_2 = arith.constant 0 : i32
    return %c0_i32, %c0_i32_0, %c0_i32_1 : i32, i32, i32
  }
  func.func @transform_1(%arg0: i32) -> (i32, i32, i32) {
    %c0_i32 = arith.constant 0 : i32
    %c0_i32_0 = arith.constant 0 : i32
    %c0_i32_1 = arith.constant 0 : i32
    %c0_i32_2 = arith.constant 0 : i32
    return %c0_i32, %c0_i32_0, %c0_i32_1 : i32, i32, i32
  }
  func.func @transform_2(%arg0: i32) -> (i32, i32, i32) {
    %c0_i32 = arith.constant 0 : i32
    %c0_i32_0 = arith.constant 0 : i32
    %c0_i32_1 = arith.constant 0 : i32
    %c0_i32_2 = arith.constant 0 : i32
    return %c0_i32, %c0_i32_0, %c0_i32_1 : i32, i32, i32
  }
  func.func @transform_3(%arg0: i32) -> (i32, i32, i32) {
    %c0_i32 = arith.constant 0 : i32
    %c0_i32_0 = arith.constant 0 : i32
    %c0_i32_1 = arith.constant 0 : i32
    %c0_i32_2 = arith.constant 0 : i32
    return %c0_i32, %c0_i32_0, %c0_i32_1 : i32, i32, i32
  }
  func.func @transform_4(%arg0: i32) -> (i32, i32, i32) {
    %c0_i32 = arith.constant 0 : i32
    %c0_i32_0 = arith.constant 0 : i32
    %c0_i32_1 = arith.constant 0 : i32
    %c0_i32_2 = arith.constant 0 : i32
    return %c0_i32, %c0_i32_0, %c0_i32_1 : i32, i32, i32
  }
  func.func @transform_5(%arg0: i32) -> (i32, i32, i32) {
    %c0_i32 = arith.constant 0 : i32
    %c0_i32_0 = arith.constant 0 : i32
    %c0_i32_1 = arith.constant 0 : i32
    %c0_i32_2 = arith.constant 0 : i32
    return %c0_i32, %c0_i32_0, %c0_i32_1 : i32, i32, i32
  }
  func.func @transform_6(%arg0: i32) -> (i32, i32, i32) {
    %c0_i32 = arith.constant 0 : i32
    %c0_i32_0 = arith.constant 0 : i32
    %c0_i32_1 = arith.constant 0 : i32
    %c0_i32_2 = arith.constant 0 : i32
    return %c0_i32, %c0_i32_0, %c0_i32_1 : i32, i32, i32
  }
  func.func @transform_7(%arg0: i32) -> (i32, i32, i32) {
    %c0_i32 = arith.constant 0 : i32
    %c0_i32_0 = arith.constant 0 : i32
    %c0_i32_1 = arith.constant 0 : i32
    %c0_i32_2 = arith.constant 0 : i32
    return %c0_i32, %c0_i32_0, %c0_i32_1 : i32, i32, i32
  }
  func.func @transform_8(%arg0: i32) -> (i32, i32, i32) {
    %c0_i32 = arith.constant 0 : i32
    %c0_i32_0 = arith.constant 0 : i32
    %c0_i32_1 = arith.constant 0 : i32
    %c0_i32_2 = arith.constant 0 : i32
    return %c0_i32, %c0_i32_0, %c0_i32_1 : i32, i32, i32
  }
  func.func @transform_9(%arg0: i32) -> (i32, i32, i32) {
    %c0_i32 = arith.constant 0 : i32
    %c0_i32_0 = arith.constant 0 : i32
    %c0_i32_1 = arith.constant 0 : i32
    %c0_i32_2 = arith.constant 0 : i32
    return %c0_i32, %c0_i32_0, %c0_i32_1 : i32, i32, i32
  }
  func.func @transform_10(%arg0: i32) -> (i32, i32, i32) {
    %c0_i32 = arith.constant 0 : i32
    %c0_i32_0 = arith.constant 0 : i32
    %c0_i32_1 = arith.constant 0 : i32
    %c0_i32_2 = arith.constant 0 : i32
    return %c0_i32, %c0_i32_0, %c0_i32_1 : i32, i32, i32
  }
  func.func @transform_11(%arg0: i32) -> (i32, i32, i32) {
    %c0_i32 = arith.constant 0 : i32
    %c0_i32_0 = arith.constant 0 : i32
    %c0_i32_1 = arith.constant 0 : i32
    %c0_i32_2 = arith.constant 0 : i32
    return %c0_i32, %c0_i32_0, %c0_i32_1 : i32, i32, i32
  }
  func.func @transform_12(%arg0: i32) -> (i32, i32, i32) {
    %c0_i32 = arith.constant 0 : i32
    %c0_i32_0 = arith.constant 0 : i32
    %c0_i32_1 = arith.constant 0 : i32
    %c0_i32_2 = arith.constant 0 : i32
    return %c0_i32, %c0_i32_0, %c0_i32_1 : i32, i32, i32
  }
  func.func @transform_13(%arg0: i32) -> (i32, i32, i32) {
    %c0_i32 = arith.constant 0 : i32
    %c0_i32_0 = arith.constant 0 : i32
    %c0_i32_1 = arith.constant 0 : i32
    %c0_i32_2 = arith.constant 0 : i32
    return %c0_i32, %c0_i32_0, %c0_i32_1 : i32, i32, i32
  }
  func.func @transform_14(%arg0: i32) -> (i32, i32, i32) {
    %c0_i32 = arith.constant 0 : i32
    %c0_i32_0 = arith.constant 0 : i32
    %c0_i32_1 = arith.constant 0 : i32
    %c0_i32_2 = arith.constant 0 : i32
    return %c0_i32, %c0_i32_0, %c0_i32_1 : i32, i32, i32
  }
  func.func @transform_15(%arg0: i32) -> (i32, i32, i32) {
    %c0_i32 = arith.constant 0 : i32
    %c0_i32_0 = arith.constant 0 : i32
    %c0_i32_1 = arith.constant 0 : i32
    %c0_i32_2 = arith.constant 0 : i32
    return %c0_i32, %c0_i32_0, %c0_i32_1 : i32, i32, i32
  }
  func.func @transform_16(%arg0: i32) -> (i32, i32, i32) {
    %c0_i32 = arith.constant 0 : i32
    %c0_i32_0 = arith.constant 0 : i32
    %c0_i32_1 = arith.constant 0 : i32
    %c0_i32_2 = arith.constant 0 : i32
    return %c0_i32, %c0_i32_0, %c0_i32_1 : i32, i32, i32
  }
  func.func @transform_17(%arg0: i32) -> (i32, i32, i32) {
    %c0_i32 = arith.constant 0 : i32
    %c0_i32_0 = arith.constant 0 : i32
    %c0_i32_1 = arith.constant 0 : i32
    %c0_i32_2 = arith.constant 0 : i32
    return %c0_i32, %c0_i32_0, %c0_i32_1 : i32, i32, i32
  }
  func.func @transform_18(%arg0: i32) -> (i32, i32, i32) {
    %c0_i32 = arith.constant 0 : i32
    %c0_i32_0 = arith.constant 0 : i32
    %c0_i32_1 = arith.constant 0 : i32
    %c0_i32_2 = arith.constant 0 : i32
    return %c0_i32, %c0_i32_0, %c0_i32_1 : i32, i32, i32
  }
  func.func @transform_19(%arg0: i32) -> (i32, i32, i32) {
    %c0_i32 = arith.constant 0 : i32
    %c0_i32_0 = arith.constant 0 : i32
    %c0_i32_1 = arith.constant 0 : i32
    %c0_i32_2 = arith.constant 0 : i32
    return %c0_i32, %c0_i32_0, %c0_i32_1 : i32, i32, i32
  }
  func.func @transform_20(%arg0: i32) -> (i32, i32, i32, i32) {
    %c0_i32 = arith.constant 0 : i32
    %c0_i32_0 = arith.constant 0 : i32
    %c0_i32_1 = arith.constant 0 : i32
    %c0_i32_2 = arith.constant 0 : i32
    %c0_i32_3 = arith.constant 0 : i32
    return %c0_i32, %c0_i32_0, %c0_i32_1, %c0_i32_2 : i32, i32, i32, i32
  }
}

</mosaic_0001>

<bundles_post_ra>
// kernel: tpu_custom_call.1
= control target key start
LH: loop header
LB: loop body
LE: loop exit
PB: predicated region body
PF: predicated region fallthrough
CT: control target
= control target key end

     0   :  { %s5833_s0 = inlined_call_operand.vmem [shape: f32[2,8,32], index: 0, kind: input, shape index: {}]   ;;  %s5834_s1 = inlined_call_operand.vmem [shape: f32[2,1,8], index: 1, kind: input, shape index: {}]   ;;  %s5835_s2 = inlined_call_operand.vmem [shape: f32[2,32,96], index: 2, kind: input, shape index: {}]   ;;  %s5836_s3 = inlined_call_operand.vmem [shape: f32[2,1,96], index: 3, kind: input, shape index: {}]   ;;  %s5837_s4 = inlined_call_operand.vmem [shape: f32[2,32,32], index: 4, kind: input, shape index: {}]   ;;  %s5838_s5 = inlined_call_operand.vmem [shape: f32[2,1,32], index: 5, kind: input, shape index: {}]   ;;  %s5839_s6 = inlined_call_operand.vmem [shape: f32[2,1,32], index: 6, kind: input, shape index: {}]   ;;  %s5840_s7 = inlined_call_operand.vmem [shape: f32[2,1,32], index: 7, kind: input, shape index: {}]   ;;  %s5841_s8 = inlined_call_operand.vmem [shape: f32[2,32,64], index: 8, kind: input, shape index: {}]   ;;  %s5842_s9 = inlined_call_operand.vmem [shape: f32[2,1,64], index: 9, kind: input, shape index: {}]   ;;  %s5843_s10 = inlined_call_operand.vmem [shape: f32[2,64,32], index: 10, kind: input, shape index: {}]   ;;  %s5844_s11 = inlined_call_operand.vmem [shape: f32[2,1,32], index: 11, kind: input, shape index: {}]   ;;  %s5845_s12 = inlined_call_operand.vmem [shape: f32[2,32,256], index: 12, kind: input, shape index: {}]   ;;  %s5846_s13 = inlined_call_operand.vmem [shape: f32[2,1,256], index: 13, kind: input, shape index: {}]   ;;  %s5847_s14 = inlined_call_operand.vmem [shape: f32[2,256,32], index: 14, kind: input, shape index: {}]   ;;  %s5848_s15 = inlined_call_operand.vmem [shape: f32[2,1,32], index: 15, kind: input, shape index: {}]   ;;  %s5849_s16 = inlined_call_operand.vmem [shape: f32[2,1,32], index: 16, kind: input, shape index: {}]   ;;  %s5850_s17 = inlined_call_operand.vmem [shape: f32[2,1,32], index: 17, kind: input, shape index: {}]   ;;  %s5851_s18 = inlined_call_operand.vmem [shape: f32[2,1,32], index: 18, kind: input, shape index: {}]   ;;  %s5852_s19 = inlined_call_operand.vmem [shape: f32[2,1,32], index: 19, kind: input, shape index: {}]   ;;  %s5853_s20 = inlined_call_operand.hbm [shape: f32[2,2,8,32], index: 20, kind: output, shape index: {}]  }
   0x1   :  { %5885 = sst [smem:[#allocation5_spill]] %s5833_s0 }
   0x2   :  { %5886 = sst [smem:[#allocation6_spill]] %s5834_s1 }
   0x3   :  { %5887 = sst [smem:[#allocation7_spill]] %s5835_s2 }
   0x4   :  { %5888 = sst [smem:[#allocation8_spill]] %s5836_s3 }
   0x5   :  { %5889 = sst [smem:[#allocation9_spill]] %s5837_s4 }
   0x6   :  { %s5890_s23 = sld [smem:[#allocation7_spill]]  ;;  %vm81_vm0 = vcmask 261120   ;;  %s5891_s29 = sld [smem:[#allocation5_spill]] }
   0xc   :  { %v70_v0 = vld [vmem:[%s5890_s23] sm:$0xff]  ;;  %v71_v1 = vld [vmem:[%s5890_s23 + $0x8] sm:$0xff]  ;;  %v72_v2 = vld [vmem:[%s5890_s23 + $0x10] sm:$0xff] }
   0xd   :  { %v4695_v3 = vpack.c.bf16 %v71_v1, %v70_v0  ;;  %v73_v4 = vld [vmem:[%s5890_s23 + $0x18] sm:$0xff]  ;;  %v5097_v5 = vld [vmem:[%s5891_s29] sm:$0xff] }
   0xe   :  { %v4699_v6 = vpack.c.bf16 %v73_v4, %v72_v2  ;;  %4439 = vmatprep.mubr.msk.f32.mxu0 %vm81_vm0, %v5097_v5 }
   0xf   :  { %25 = vsyncpa [#allocation3], 0  ;;  %4696 = vmatprep.subr.bf16.mxu0 %v4695_v3  ;;  %v5104_v7 = vld [vmem:[%s5891_s29 + $0x8] sm:$0xff]  ;;  %v4959_v8 = vmov 0.0   ;;  %vm4960_vm1 = vmmov 0   ;;  %s5892_s22 = sld [smem:[#allocation8_spill]] }
  0x10   :  { %4698 = vmatpush3.bf16.msra.mxu0 %v4695_v3  ;;  %4447 = vmatprep.subr.mxu1 %v4959_v8  ;;  %s4961_s24 = smov 96   ;;  %vm166_vm2 = vcmask 64512   ;;  %s5893_s3 = sld [smem:[#allocation6_spill]]  ;;  %vm1536_vm3 = vcmask 130048   ;;  %vm1539_vm4 = vcmask 195584   ;;  %vm1806_vm5 = vcmask 523264  }
  0x11   :  { %4700 = vmatprep.subr.bf16.mxu0 %v4699_v6  ;;  %4449 = vmatprep.mubr.msk.f32.mxu1 %vm4960_vm1, %v4959_v8  ;;  %s5883_s28 = smov 64   ;;  %s5881_s4 = smov 88  }
  0x12   :  { %s5877_s29 = smov 120   ;;  %s5875_s30 = smov 56  }
  0x13   :  { %s5873_s0 = smov 80   ;;  %s5871_s21 = smov 112  }
  0x14   :  { %4702 = vmatpush3.bf16.msra.mxu0 %v4699_v6  ;;  %s5865_s1 = smov 48   ;;  %s5863_s2 = smov 72  }
  0x15   :  { %4442 = vmatprep.subr.mxu0 %v4959_v8  ;;  %v4114_v9 = vld [vmem:[%s5892_s22] ss:$0 sm:$0xff]  ;;  %s5859_s25 = smov 104   ;;  %s5867_s26 = smov 40  }
  0x16   :  { %v5140_v17 = vld [vmem:[%s5893_s3] ss:$0 sm:$0xff]  ;;  %v5146_v22 = vld [vmem:[%s5893_s3 + $0x1] ss:$0 sm:$0xff]  ;;  %s5861_s27 = smov 8  }
  0x17   :  { %4440 = vmatmul.mubr.msk.f32.vlgmr.msra.gmra.mrb[0].mxu0 %vm81_vm0, %v5104_v7 }
  0x18   :  { %4444 = vmatprep.mubr.msk.f32.mxu0 %vm4960_vm1, %v4959_v8 }
  0xea   :  { %v4441_v10 = vpop.f32.mrb[0].mxu0 }
  0xeb   :  { %v154_v11 = vpop.f32.mrb[1].mxu0  ;;  %v5121_v13 = vadd.f32 %v4441_v10, %v4114_v9 }
  0xec   :  { %v5117_v12 = vadd.f32 %v4114_v9, %v154_v11 }
  0xee   :  { %164 = vrot.lane.b32.xlu0 %v5117_v12, %s4961_s24 }
  0xf2   :  { %242 = vrot.lane.b32.xlu0 %v5121_v13, %s4961_s24 }
 0x160   :  { %v165_v14 = vpop.permute.xlu0 %164 }
 0x161   :  { %4443 = vmatpush3.xpose.msk.msra.mxu0 %vm166_vm2, %v165_v14 }
 0x162   :  { %4452 = vmatprep.subr.mxu0 %v4959_v8 }
 0x164   :  { %4445 = vmatmul.mubr.msk.f32.vlgmr.msra.gmra.mrb[2].mxu0 %vm166_vm2, %v5117_v12  ;;  %v243_v15 = vpop.permute.xlu0 %242 }
 0x165   :  { %4448 = vmatpush3.xpose.msk.msra.mxu1 %vm166_vm2, %v243_v15  ;;  %4454 = vmatprep.mubr.msk.f32.mxu0 %vm4960_vm1, %v4959_v8 }
 0x166   :  { %4457 = vmatprep.subr.mxu1 %v4959_v8 }
 0x168   :  { %4450 = vmatmul.mubr.msk.f32.vlgmr.msra.gmra.mrb[0].mxu1 %vm166_vm2, %v5121_v13 }
 0x169   :  { %4459 = vmatprep.mubr.msk.f32.mxu1 %vm4960_vm1, %v4959_v8 }
 0x237   :  { %v237_v16 = vpop.f32.mrb[2].mxu0 }
 0x238   :  { %v318_v18 = vmul.f32 0.35355338, %v237_v16  ;;  %v4446_v19 = vpop.f32.mrb[3].mxu0 }
 0x23a   :  { %v332_v20 = vadd.f32 %v5140_v17, %v318_v18 }
 0x23b   :  { %v314_v21 = vpop.f32.mrb[0].mxu1 }
 0x23c   :  { %v319_v23 = vmul.f32 0.35355338, %v314_v21  ;;  %v4451_v24 = vpop.f32.mrb[1].mxu1  ;;  %v334_v25 = vsel %vm166_vm2, %v332_v20, -inf }
 0x23d   :  { %335 = vmax.xlane.f32.xlu1 %v334_v25 }
 0x23e   :  { %v333_v26 = vadd.f32 %v5146_v22, %v319_v23 }
 0x240   :  { %v337_v27 = vsel %vm166_vm2, %v333_v26, -inf }
 0x241   :  { %338 = vmax.xlane.f32.xlu1 %v337_v27 }
 0x252   :  { %356 = vrot.lane.b32.xlu1 %v5117_v12, %s5883_s28 }
 0x256   :  { %432 = vrot.lane.b32.xlu1 %v5121_v13, %s5883_s28 }
 0x25a   :  { %510 = vrot.lane.b32.xlu1 %v5117_v12, %s5881_s4 }
 0x25e   :  { %588 = vrot.lane.b32.xlu1 %v5121_v13, %s5881_s4 }
 0x2ca   :  { %v336_v28 = vpop.xlane.xlu1 %335 }
 0x2cb   :  { %v340_v29 = vsub.f32 %v332_v20, %v336_v28 }
 0x2cd   :  { %v342_v30 = vmul.f32 1.442695, %v340_v29 }
 0x2ce   :  { %v339_v31 = vpop.xlane.xlu1 %338 }
 0x2cf   :  { %4833 = vpow2.f32 %v342_v30  ;;  %v341_v32 = vsub.f32 %v333_v26, %v339_v31 }
 0x2d1   :  { %v344_v33 = vmul.f32 1.442695, %v341_v32 }
 0x2d2   :  { %v357_v34 = vpop.permute.xlu1 %356 }
 0x2d3   :  { %4835 = vpow2.f32 %v344_v33  ;;  %4453 = vmatpush3.msra.mxu0 %v357_v34 }
 0x2d4   :  { %4462 = vmatprep.subr.mxu0 %v4959_v8 }
 0x2d6   :  { %v433_v35 = vpop.permute.xlu1 %432 }
 0x2d7   :  { %4458 = vmatpush3.msra.mxu1 %v433_v35 }
 0x2d8   :  { %4467 = vmatprep.subr.mxu1 %v4959_v8 }
 0x2d9   :  { %v4834_v36 = vpop.eup %4833 }
 0x2da   :  { %v346_v37 = vsel %vm166_vm2, %v4834_v36, 0.0  ;;  %v511_v40 = vpop.permute.xlu1 %510 }
 0x2db   :  { %347 = vadd.xlane.f32.xlu0 %v346_v37 }
 0x2dd   :  { %v4836_v38 = vpop.eup %4835 }
 0x2de   :  { %v349_v39 = vsel %vm166_vm2, %v4836_v38, 0.0  ;;  %v589_v41 = vpop.permute.xlu1 %588 }
 0x2df   :  { %350 = vadd.xlane.f32.xlu1 %v349_v39 }
 0x2f0   :  { %586 = vrot.lane.b32.xlu1 %v5121_v13, %s5877_s29 }
 0x2f1   :  { %508 = vrot.lane.b32.xlu0 %v5117_v12, %s5877_s29  ;;  %s5904_s29 = smov 40  }
 0x368   :  { %v348_v42 = vpop.xlane.xlu0 %347 }
 0x369   :  { %4837 = vrcp.f32 %v348_v42 }
 0x36c   :  { %v351_v43 = vpop.xlane.xlu1 %350  ;;  %v509_v48 = vpop.permute.xlu0 %508 }
 0x36d   :  { %4839 = vrcp.f32 %v351_v43 }
 0x370   :  { %v587_v49 = vpop.permute.xlu1 %586 }
 0x373   :  { %v4838_v44 = vpop.eup %4837 }
 0x374   :  { %v354_v45 = vmul.f32 %v4838_v44, %v4834_v36 }
 0x376   :  { %4455 = vmatmul.mubr.msk.f32.vlgmr.msra.gmra.mrb[4].mxu0 %vm166_vm2, %v354_v45 }
 0x377   :  { %v4840_v46 = vpop.eup %4839  ;;  %4463 = vmatpush3.xpose.msk.msra.mxu0 %vm166_vm2, %v511_v40  ;;  %4464 = vmatprep.mubr.msk.f32.mxu0 %vm4960_vm1, %v4959_v8 }
 0x378   :  { %v355_v47 = vmul.f32 %v4840_v46, %v4836_v38  ;;  %4472 = vmatprep.subr.mxu0 %v4959_v8 }
 0x37a   :  { %4460 = vmatmul.mubr.msk.f32.vlgmr.msra.gmra.mrb[2].mxu1 %vm166_vm2, %v355_v47  ;;  %4465 = vmatmul.mubr.msk.f32.vlgmr.msra.gmra.mrb[6].mxu0 %vm166_vm2, %v509_v48 }
 0x37b   :  { %4468 = vmatpush3.xpose.msk.msra.mxu1 %vm166_vm2, %v589_v41  ;;  %4469 = vmatprep.mubr.msk.f32.mxu1 %vm4960_vm1, %v4959_v8 }
 0x37c   :  { %4477 = vmatprep.subr.mxu1 %v4959_v8  ;;  %4474 = vmatprep.mubr.msk.f32.mxu0 %vm4960_vm1, %v4959_v8 }
 0x37e   :  { %4470 = vmatmul.mubr.msk.f32.vlgmr.msra.gmra.mrb[4].mxu1 %vm166_vm2, %v587_v49 }
 0x37f   :  { %4479 = vmatprep.mubr.msk.f32.mxu1 %vm4960_vm1, %v4959_v8 }
 0x449   :  { %v5183_v50 = vpop.f32.mrb[4].mxu0 }
 0x44a   :  { %v4456_v51 = vpop.f32.mrb[5].mxu0 }
 0x44d   :  { %v5185_v52 = vpop.f32.mrb[2].mxu1  ;;  %v582_v53 = vpop.f32.mrb[6].mxu0 }
 0x44e   :  { %v664_v54 = vmul.f32 0.35355338, %v582_v53  ;;  %v4461_v55 = vpop.f32.mrb[3].mxu1  ;;  %v4466_v56 = vpop.f32.mrb[7].mxu0 }
 0x450   :  { %v666_v57 = vadd.f32 %v5140_v17, %v664_v54 }
 0x451   :  { %v660_v58 = vpop.f32.mrb[4].mxu1 }
 0x452   :  { %v665_v59 = vmul.f32 0.35355338, %v660_v58  ;;  %v4471_v60 = vpop.f32.mrb[5].mxu1  ;;  %v668_v61 = vsel %vm166_vm2, %v666_v57, -inf }
 0x453   :  { %669 = vmax.xlane.f32.xlu1 %v668_v61 }
 0x454   :  { %v667_v62 = vadd.f32 %v5146_v22, %v665_v59 }
 0x456   :  { %v671_v63 = vsel %vm166_vm2, %v667_v62, -inf }
 0x457   :  { %672 = vmax.xlane.f32.xlu0 %v671_v63 }
 0x464   :  { %690 = vrot.lane.b32.xlu1 %v5117_v12, %s5875_s30 }
 0x468   :  { %844 = vrot.lane.b32.xlu1 %v5117_v12, %s5873_s0 }
 0x46c   :  { %922 = vrot.lane.b32.xlu1 %v5121_v13, %s5873_s0 }
 0x46d   :  { %766 = vrot.lane.b32.xlu0 %v5121_v13, %s5875_s30  ;;  %s5897_s30 = smov 120  }
 0x471   :  { %842 = vrot.lane.b32.xlu0 %v5117_v12, %s5871_s21 }
 0x4e0   :  { %v670_v0 = vpop.xlane.xlu1 %669 }
 0x4e1   :  { %v674_v1 = vsub.f32 %v666_v57, %v670_v0 }
 0x4e3   :  { %v676_v6 = vmul.f32 1.442695, %v674_v1 }
 0x4e4   :  { %v673_v2 = vpop.xlane.xlu0 %672  ;;  %v691_v3 = vpop.permute.xlu1 %690 }
 0x4e5   :  { %v675_v4 = vsub.f32 %v667_v62, %v673_v2  ;;  %4473 = vmatpush3.msra.mxu0 %v691_v3 }
 0x4e6   :  { %4482 = vmatprep.subr.mxu0 %v4959_v8 }
 0x4e7   :  { %v678_v9 = vmul.f32 1.442695, %v675_v4 }
 0x4e8   :  { %v767_v10 = vpop.permute.xlu0 %766  ;;  %v845_v18 = vpop.permute.xlu1 %844 }
 0x4e9   :  { %4841 = vpow2.f32 %v678_v9  ;;  %4478 = vmatpush3.msra.mxu1 %v767_v10 }
 0x4ea   :  { %4487 = vmatprep.subr.mxu1 %v4959_v8  ;;  %4843 = vpow2.f32 %v676_v6 }
 0x4ec   :  { %v923_v19 = vpop.permute.xlu1 %922  ;;  %v843_v28 = vpop.permute.xlu0 %842 }
 0x4f3   :  { %v4842_v11 = vpop.eup %4841 }
 0x4f4   :  { %v683_v14 = vsel %vm166_vm2, %v4842_v11, 0.0  ;;  %v4844_v15 = vpop.eup %4843 }
 0x4f5   :  { %684 = vadd.xlane.f32.xlu1 %v683_v14  ;;  %v680_v16 = vsel %vm166_vm2, %v4844_v15, 0.0 }
 0x4f9   :  { %681 = vadd.xlane.f32.xlu1 %v680_v16 }
 0x50a   :  { %920 = vrot.lane.b32.xlu1 %v5121_v13, %s5871_s21 }
 0x582   :  { %v685_v20 = vpop.xlane.xlu1 %684 }
 0x583   :  { %4845 = vrcp.f32 %v685_v20 }
 0x586   :  { %v682_v21 = vpop.xlane.xlu1 %681 }
 0x587   :  { %4847 = vrcp.f32 %v682_v21 }
 0x58a   :  { %v921_v27 = vpop.permute.xlu1 %920 }
 0x58d   :  { %v4846_v23 = vpop.eup %4845 }
 0x58e   :  { %v689_v24 = vmul.f32 %v4846_v23, %v4842_v11 }
 0x590   :  { %4480 = vmatmul.mubr.msk.f32.vlgmr.msra.gmra.mrb[6].mxu1 %vm166_vm2, %v689_v24 }
 0x591   :  { %v4848_v25 = vpop.eup %4847  ;;  %4488 = vmatpush3.xpose.msk.msra.mxu1 %vm166_vm2, %v923_v19  ;;  %4489 = vmatprep.mubr.msk.f32.mxu1 %vm4960_vm1, %v4959_v8 }
 0x592   :  { %v688_v26 = vmul.f32 %v4848_v25, %v4844_v15  ;;  %4497 = vmatprep.subr.mxu1 %v4959_v8 }
 0x594   :  { %4475 = vmatmul.mubr.msk.f32.vlgmr.msra.gmra.mrb[8].mxu0 %vm166_vm2, %v688_v26  ;;  %4490 = vmatmul.mubr.msk.f32.vlgmr.msra.gmra.mrb[8].mxu1 %vm166_vm2, %v921_v27 }
 0x595   :  { %4483 = vmatpush3.xpose.msk.msra.mxu0 %vm166_vm2, %v845_v18  ;;  %4484 = vmatprep.mubr.msk.f32.mxu0 %vm4960_vm1, %v4959_v8 }
 0x596   :  { %4492 = vmatprep.subr.mxu0 %v4959_v8  ;;  %4499 = vmatprep.mubr.msk.f32.mxu1 %vm4960_vm1, %v4959_v8 }
 0x598   :  { %4485 = vmatmul.mubr.msk.f32.vlgmr.msra.gmra.mrb[10].mxu0 %vm166_vm2, %v843_v28 }
 0x599   :  { %4494 = vmatprep.mubr.msk.f32.mxu0 %vm4960_vm1, %v4959_v8 }
 0x663   :  { %v5223_v29 = vpop.f32.mrb[6].mxu1 }
 0x664   :  { %v4481_v30 = vpop.f32.mrb[7].mxu1 }
 0x667   :  { %v5225_v31 = vpop.f32.mrb[8].mxu0  ;;  %v994_v32 = vpop.f32.mrb[8].mxu1 }
 0x668   :  { %v999_v33 = vmul.f32 0.35355338, %v994_v32  ;;  %v4476_v34 = vpop.f32.mrb[9].mxu0  ;;  %v4491_v35 = vpop.f32.mrb[9].mxu1 }
 0x66a   :  { %v1001_v36 = vadd.f32 %v5146_v22, %v999_v33 }
 0x66b   :  { %v916_v37 = vpop.f32.mrb[10].mxu0 }
 0x66c   :  { %v998_v38 = vmul.f32 0.35355338, %v916_v37  ;;  %v4486_v39 = vpop.f32.mrb[11].mxu0  ;;  %v1005_v40 = vsel %vm166_vm2, %v1001_v36, -inf }
 0x66d   :  { %1006 = vmax.xlane.f32.xlu1 %v1005_v40 }
 0x66e   :  { %v1000_v41 = vadd.f32 %v5140_v17, %v998_v38 }
 0x670   :  { %v1002_v42 = vsel %vm166_vm2, %v1000_v41, -inf }
 0x671   :  { %1003 = vmax.xlane.f32.xlu0 %v1002_v42 }
 0x67e   :  { %1024 = vrot.lane.b32.xlu1 %v5117_v12, %s5865_s1 }
 0x682   :  { %1178 = vrot.lane.b32.xlu1 %v5117_v12, %s5863_s2 }
 0x686   :  { %1256 = vrot.lane.b32.xlu1 %v5121_v13, %s5863_s2  ;;  %s5879_s2 = smov 24  }
 0x687   :  { %1100 = vrot.lane.b32.xlu0 %v5121_v13, %s5865_s1  ;;  %s5894_s1 = sld [smem:[#allocation9_spill]] }
 0x68a   :  { %1254 = vrot.lane.b32.xlu1 %v5121_v13, %s5859_s25 }
 0x6fa   :  { %v1007_v43 = vpop.xlane.xlu1 %1006 }
 0x6fb   :  { %v1009_v44 = vsub.f32 %v1001_v36, %v1007_v43  ;;  %v1544_v43 = vld [vmem:[%s5894_s1 + $0x10] sm:$0xff] }
 0x6fd   :  { %v1012_v45 = vmul.f32 1.442695, %v1009_v44  ;;  %v1545_v44 = vld [vmem:[%s5894_s1 + $0x18] sm:$0xff] }
 0x6fe   :  { %v1004_v46 = vpop.xlane.xlu0 %1003  ;;  %v1025_v47 = vpop.permute.xlu1 %1024 }
 0x6ff   :  { %4849 = vpow2.f32 %v1012_v45  ;;  %v1008_v48 = vsub.f32 %v1000_v41, %v1004_v46  ;;  %4493 = vmatpush3.msra.mxu0 %v1025_v47  ;;  %v1543_v41 = vld [vmem:[%s5894_s1 + $0x8] sm:$0xff]  ;;  %v4707_v45 = vpack.c.bf16 %v1545_v44, %v1544_v43 }
 0x700   :  { %4502 = vmatprep.subr.mxu0 %v4959_v8  ;;  %v1792_v43 = vld [vmem:[%s5843_s10 + $0x8] sm:$0xff] }
 0x701   :  { %v1010_v49 = vmul.f32 1.442695, %v1008_v48 }
 0x702   :  { %v1101_v51 = vpop.permute.xlu0 %1100  ;;  %v1179_v59 = vpop.permute.xlu1 %1178 }
 0x703   :  { %4851 = vpow2.f32 %v1010_v49  ;;  %4498 = vmatpush3.msra.mxu1 %v1101_v51 }
 0x704   :  { %4507 = vmatprep.subr.mxu1 %v4959_v8 }
 0x706   :  { %v1257_v61 = vpop.permute.xlu1 %1256 }
 0x709   :  { %v4850_v53 = vpop.eup %4849 }
 0x70a   :  { %v1017_v54 = vsel %vm166_vm2, %v4850_v53, 0.0  ;;  %v1255_v1 = vpop.permute.xlu1 %1254 }
 0x70b   :  { %1018 = vadd.xlane.f32.xlu0 %v1017_v54 }
 0x70d   :  { %v4852_v55 = vpop.eup %4851 }
 0x70e   :  { %v1014_v56 = vsel %vm166_vm2, %v4852_v55, 0.0 }
 0x70f   :  { %1015 = vadd.xlane.f32.xlu0 %v1014_v56 }
 0x725   :  { %1176 = vrot.lane.b32.xlu0 %v5117_v12, %s5859_s25  ;;  %s5869_s25 = smov 16  }
 0x798   :  { %v1019_v57 = vpop.xlane.xlu0 %1018 }
 0x799   :  { %4853 = vrcp.f32 %v1019_v57 }
 0x79c   :  { %v1016_v58 = vpop.xlane.xlu0 %1015 }
 0x79d   :  { %4855 = vrcp.f32 %v1016_v58 }
 0x7a0   :  { %v1177_v2 = vpop.permute.xlu0 %1176 }
 0x7a3   :  { %v4854_v60 = vpop.eup %4853 }
 0x7a4   :  { %v1023_v62 = vmul.f32 %v4854_v60, %v4850_v53 }
 0x7a6   :  { %4500 = vmatmul.mubr.msk.f32.vlgmr.msra.gmra.mrb[10].mxu1 %vm166_vm2, %v1023_v62 }
 0x7a7   :  { %v4856_v63 = vpop.eup %4855  ;;  %4508 = vmatpush3.xpose.msk.msra.mxu1 %vm166_vm2, %v1257_v61  ;;  %4509 = vmatprep.mubr.msk.f32.mxu1 %vm4960_vm1, %v4959_v8 }
 0x7a8   :  { %v1022_v0 = vmul.f32 %v4856_v63, %v4852_v55  ;;  %4517 = vmatprep.subr.mxu1 %v4959_v8 }
 0x7aa   :  { %4495 = vmatmul.mubr.msk.f32.vlgmr.msra.gmra.mrb[12].mxu0 %vm166_vm2, %v1022_v0  ;;  %4510 = vmatmul.mubr.msk.f32.vlgmr.msra.gmra.mrb[12].mxu1 %vm166_vm2, %v1255_v1 }
 0x7ab   :  { %4503 = vmatpush3.xpose.msk.msra.mxu0 %vm166_vm2, %v1179_v59  ;;  %4504 = vmatprep.mubr.msk.f32.mxu0 %vm4960_vm1, %v4959_v8 }
 0x7ac   :  { %4512 = vmatprep.subr.mxu0 %v4959_v8  ;;  %4519 = vmatprep.mubr.msk.f32.mxu1 %vm4960_vm1, %v4959_v8 }
 0x7ae   :  { %4505 = vmatmul.mubr.msk.f32.vlgmr.msra.gmra.mrb[14].mxu0 %vm166_vm2, %v1177_v2 }
 0x7af   :  { %4514 = vmatprep.mubr.msk.f32.mxu0 %vm4960_vm1, %v4959_v8 }
 0x879   :  { %v1172_v3 = vpop.f32.mrb[10].mxu1 }
 0x87a   :  { %v4501_v4 = vpop.f32.mrb[11].mxu1 }
 0x87d   :  { %v1096_v6 = vpop.f32.mrb[12].mxu0  ;;  %v1328_v9 = vpop.f32.mrb[12].mxu1 }
 0x87e   :  { %v1333_v10 = vmul.f32 0.35355338, %v1328_v9  ;;  %v4496_v11 = vpop.f32.mrb[13].mxu0  ;;  %v4511_v14 = vpop.f32.mrb[13].mxu1 }
 0x880   :  { %v1335_v15 = vadd.f32 %v5146_v22, %v1333_v10 }
 0x881   :  { %v1250_v16 = vpop.f32.mrb[14].mxu0 }
 0x882   :  { %v1332_v18 = vmul.f32 0.35355338, %v1250_v16  ;;  %v4506_v19 = vpop.f32.mrb[15].mxu0  ;;  %v1339_v20 = vsel %vm166_vm2, %v1335_v15, -inf }
 0x883   :  { %1340 = vmax.xlane.f32.xlu1 %v1339_v20 }
 0x884   :  { %v1334_v21 = vadd.f32 %v5140_v17, %v1332_v18 }
 0x886   :  { %v1336_v23 = vsel %vm166_vm2, %v1334_v21, -inf }
 0x887   :  { %1337 = vmax.xlane.f32.xlu0 %v1336_v23  ;;  %v1682_v23 = vld [vmem:[%s5841_s8 + $0x8] sm:$0xff] }
 0x894   :  { %1358 = vrot.lane.b32.xlu1 %v5117_v12, %s5867_s26 }
 0x898   :  { %1512 = vrot.lane.b32.xlu1 %v5225_v31, %s5861_s27 }
 0x89c   :  { %1514 = vrot.lane.b32.xlu1 %v5223_v29, %s5861_s27  ;;  %s5903_s27 = smov 104  }
 0x8a0   :  { %1522 = vrot.lane.b32.xlu1 %v1172_v3, %s5869_s25 }
 0x910   :  { %v1341_v24 = vpop.xlane.xlu1 %1340 }
 0x911   :  { %v1343_v25 = vsub.f32 %v1335_v15, %v1341_v24 }
 0x913   :  { %v1346_v26 = vmul.f32 1.442695, %v1343_v25  ;;  %v1683_v25 = vld [vmem:[%s5841_s8 + $0x10] sm:$0xff] }
 0x914   :  { %v1338_v27 = vpop.xlane.xlu0 %1337  ;;  %v1359_v28 = vpop.permute.xlu1 %1358 }
 0x915   :  { %4857 = vpow2.f32 %v1346_v26  ;;  %v1342_v30 = vsub.f32 %v1334_v21, %v1338_v27  ;;  %4513 = vmatpush3.msra.mxu0 %v1359_v28  ;;  %v1684_v26 = vld [vmem:[%s5841_s8 + $0x18] sm:$0xff] }
 0x916   :  { %v4715_v27 = vpack.c.bf16 %v1684_v26, %v1683_v25 }
 0x917   :  { %v1344_v32 = vmul.f32 1.442695, %v1342_v30 }
 0x918   :  { %v1513_v51 = vpop.permute.xlu1 %1512 }
 0x919   :  { %4859 = vpow2.f32 %v1344_v32  ;;  %v1534_v56 = vsel %vm166_vm2, %v5183_v50, %v1513_v51  ;;  %v4143_v50 = vld [vmem:[%s5838_s5] ss:$0 sm:$0xff] }
 0x91c   :  { %v1515_v53 = vpop.permute.xlu1 %1514 }
 0x91d   :  { %v1535_v58 = vsel %vm166_vm2, %v5185_v52, %v1515_v53  ;;  %v1797_v53 = vld [vmem:[%s5843_s10 + $0x30] sm:$0xff] }
 0x91f   :  { %v4858_v12 = vpop.eup %4857 }
 0x920   :  { %v1351_v33 = vsel %vm166_vm2, %v4858_v12, 0.0  ;;  %v1523_v54 = vpop.permute.xlu1 %1522 }
 0x921   :  { %1352 = vadd.xlane.f32.xlu0 %v1351_v33  ;;  %v1538_v61 = vsel %vm1536_vm3, %v1535_v58, %v1523_v54  ;;  %v1798_v54 = vld [vmem:[%s5843_s10 + $0x38] sm:$0xff] }
 0x923   :  { %v4860_v31 = vpop.eup %4859 }
 0x924   :  { %v1348_v29 = vsel %vm166_vm2, %v4860_v31, 0.0 }
 0x925   :  { %1349 = vadd.xlane.f32.xlu0 %v1348_v29 }
 0x93b   :  { %1434 = vrot.lane.b32.xlu0 %v5121_v13, %s5867_s26  ;;  %v1542_v13 = vld [vmem:[%s5894_s1] sm:$0xff]  ;;  %s5902_s26 = smov 72  }
 0x93c   :  { %v4703_v42 = vpack.c.bf16 %v1543_v41, %v1542_v13 }
 0x93e   :  { %4704 = vmatprep.subr.bf16.mxu0 %v4703_v42 }
 0x93f   :  { %1520 = vrot.lane.b32.xlu0 %v1096_v6, %s5869_s25  ;;  %s5898_s25 = smov 56  }
 0x9ae   :  { %v1353_v34 = vpop.xlane.xlu0 %1352 }
 0x9af   :  { %4861 = vrcp.f32 %v1353_v34  ;;  %v4146_v34 = vld [vmem:[%s5839_s6] ss:$0 sm:$0xff] }
 0x9b2   :  { %v1350_v35 = vpop.xlane.xlu0 %1349 }
 0x9b3   :  { %4863 = vrcp.f32 %v1350_v35 }
 0x9b6   :  { %v1435_v36 = vpop.permute.xlu0 %1434 }
 0x9b7   :  { %4518 = vmatpush3.msra.mxu1 %v1435_v36  ;;  %v4147_v36 = vld [vmem:[%s5840_s7] ss:$0 sm:$0xff] }
 0x9b9   :  { %v4862_v37 = vpop.eup %4861 }
 0x9ba   :  { %v1357_v38 = vmul.f32 %v4862_v37, %v4858_v12  ;;  %v1521_v55 = vpop.permute.xlu0 %1520 }
 0x9bb   :  { %v1537_v59 = vsel %vm1536_vm3, %v1534_v56, %v1521_v55  ;;  %v4731_v55 = vpack.c.bf16 %v1798_v54, %v1797_v53  ;;  %v4148_v56 = vld [vmem:[%s5842_s9] ss:$0 sm:$0xff] }
 0x9bc   :  { %4520 = vmatmul.mubr.msk.f32.vlgmr.msra.gmra.mrb[14].mxu1 %vm166_vm2, %v1357_v38  ;;  %v4155_v54 = vld [vmem:[%s5850_s17] ss:$0 sm:$0xff] }
 0x9bd   :  { %v4864_v39 = vpop.eup %4863 }
 0x9be   :  { %v1356_v40 = vmul.f32 %v4864_v39, %v4860_v31 }
 0x9c0   :  { %4515 = vmatmul.mubr.msk.f32.vlgmr.msra.gmra.mrb[16].mxu0 %vm166_vm2, %v1356_v40 }
 0x9c1   :  { %4706 = vmatpush3.bf16.msra.mxu0 %v4703_v42  ;;  %v1791_v42 = vld [vmem:[%s5843_s10] sm:$0xff] }
 0x9c2   :  { %4708 = vmatprep.subr.bf16.mxu0 %v4707_v45  ;;  %v4719_v44 = vpack.c.bf16 %v1792_v43, %v1791_v42 }
 0x9c5   :  { %4710 = vmatpush3.bf16.msra.mxu0 %v4707_v45  ;;  %v1793_v45 = vld [vmem:[%s5843_s10 + $0x10] sm:$0xff] }
 0xa8f   :  { %v1506_v46 = vpop.f32.mrb[14].mxu1 }
 0xa90   :  { %1530 = vrot.lane.b32.xlu1 %v1506_v46, %s5879_s2  ;;  %v4521_v47 = vpop.f32.mrb[15].mxu1  ;;  %v1794_v46 = vld [vmem:[%s5843_s10 + $0x18] sm:$0xff] }
 0xa91   :  { %v4723_v47 = vpack.c.bf16 %v1794_v46, %v1793_v45 }
 0xa93   :  { %v1430_v48 = vpop.f32.mrb[16].mxu0 }
 0xa94   :  { %1528 = vrot.lane.b32.xlu0 %v1430_v48, %s5879_s2  ;;  %v4516_v49 = vpop.f32.mrb[17].mxu0  ;;  %v1795_v48 = vld [vmem:[%s5843_s10 + $0x20] sm:$0xff]  ;;  %s5899_s2 = smov 80  }
 0xa95   :  { %v1796_v49 = vld [vmem:[%s5843_s10 + $0x28] sm:$0xff] }
 0xa96   :  { %v4727_v51 = vpack.c.bf16 %v1796_v49, %v1795_v48  ;;  %v4154_v48 = vld [vmem:[%s5849_s16] ss:$0 sm:$0xff] }
 0xb02   :  { %v1531_v57 = vpop.permute.xlu1 %1530 }
 0xb03   :  { %v1541_v63 = vsel %vm1539_vm4, %v1538_v61, %v1531_v57 }
 0xb06   :  { %v1529_v60 = vpop.permute.xlu0 %1528 }
 0xb07   :  { %v1540_v62 = vsel %vm1539_vm4, %v1537_v59, %v1529_v60 }
 0xb08   :  { %4530 = vmatprep.mubr.msk.f32.mxu0 %vm81_vm0, %v1540_v62 }
 0xb09   :  { %4531 = vmatmul.mubr.msk.f32.vlgmr.msra.gmra.mrb[18].mxu0 %vm81_vm0, %v1541_v63 }
 0xbdc   :  { %v4532_v0 = vpop.f32.mrb[18].mxu0 }
 0xbdd   :  { %v1631_v1 = vadd.f32 %v4532_v0, %v4143_v50  ;;  %v1625_v52 = vpop.f32.mrb[19].mxu0 }
 0xbde   :  { %v1626_v2 = vadd.f32 %v4143_v50, %v1625_v52 }
 0xbdf   :  { %v1635_v3 = vadd.f32 %v1631_v1, %v5104_v7 }
 0xbe0   :  { %v1634_v4 = vadd.f32 %v1626_v2, %v5097_v5  ;;  %v1681_v5 = vld [vmem:[%s5841_s8] sm:$0xff] }
 0xbe1   :  { %v1641_v6 = vsel %vm81_vm0, %v1635_v3, 0.0  ;;  %v4711_v24 = vpack.c.bf16 %v1682_v23, %v1681_v5 }
 0xbe2   :  { %1642 = vadd.xlane.f32.xlu1 %v1641_v6  ;;  %v1638_v9 = vsel %vm81_vm0, %v1634_v4, 0.0 }
 0xbe3   :  { %1639 = vadd.xlane.f32.xlu0 %v1638_v9  ;;  %4712 = vmatprep.subr.bf16.mxu0 %v4711_v24 }
 0xbe4   :  { %4714 = vmatpush3.bf16.msra.mxu0 %v4711_v24 }
 0xbe5   :  { %4716 = vmatprep.subr.bf16.mxu0 %v4715_v27 }
 0xbe8   :  { %4718 = vmatpush3.bf16.msra.mxu0 %v4715_v27 }
 0xbe9   :  { %4720 = vmatprep.subr.bf16.mxu0 %v4719_v44 }
 0xc6f   :  { %v1643_v10 = vpop.xlane.xlu1 %1642 }
 0xc70   :  { %v1646_v11 = vmul.f32 0.03125, %v1643_v10  ;;  %v1640_v14 = vpop.xlane.xlu0 %1639 }
 0xc71   :  { %v1645_v15 = vmul.f32 0.03125, %v1640_v14 }
 0xc72   :  { %v1648_v16 = vsub.f32 %v1635_v3, %v1646_v11 }
 0xc73   :  { %v1647_v18 = vsub.f32 %v1634_v4, %v1645_v15 }
 0xc74   :  { %v1650_v21 = vmul.f32 %v1648_v16, %v1648_v16 }
 0xc75   :  { %v1649_v19 = vmul.f32 %v1647_v18, %v1647_v18 }
 0xc76   :  { %v1654_v7 = vsel %vm81_vm0, %v1650_v21, 0.0 }
 0xc77   :  { %v1651_v20 = vsel %vm81_vm0, %v1649_v19, 0.0  ;;  %v4151_v19 = vld [vmem:[%s5844_s11] ss:$0 sm:$0xff] }
 0xc78   :  { %1652 = vadd.xlane.f32.xlu0 %v1651_v20 }
 0xc7c   :  { %1655 = vadd.xlane.f32.xlu0 %v1654_v7 }
 0xd05   :  { %v1653_v28 = vpop.xlane.xlu0 %1652 }
 0xd06   :  { %v1657_v30 = vmul.f32 0.03125, %v1653_v28 }
 0xd08   :  { %v1659_v32 = vadd.f32 1e-12, %v1657_v30 }
 0xd09   :  { %v1656_v12 = vpop.xlane.xlu0 %1655 }
 0xd0a   :  { %4865 = vrsqrt.f32 %v1659_v32  ;;  %v1658_v33 = vmul.f32 0.03125, %v1656_v12 }
 0xd0c   :  { %v1660_v31 = vadd.f32 1e-12, %v1658_v33 }
 0xd0e   :  { %4867 = vrsqrt.f32 %v1660_v31 }
 0xd14   :  { %v4866_v29 = vpop.eup %4865 }
 0xd15   :  { %v1663_v35 = vmul.f32 %v4866_v29, %v1647_v18 }
 0xd17   :  { %v1671_v37 = vmul.f32 %v4146_v34, %v1663_v35 }
 0xd18   :  { %v4868_v38 = vpop.eup %4867 }
 0xd19   :  { %v1664_v39 = vmul.f32 %v4868_v38, %v1648_v16  ;;  %v1679_v40 = vadd.f32 %v4147_v36, %v1671_v37  ;;  %v4157_v37 = vld [vmem:[%s5890_s23 + $0x28] sm:$0xff] }
 0xd1b   :  { %v1672_v13 = vmul.f32 %v4146_v34, %v1664_v39  ;;  %4541 = vmatprep.mubr.msk.f32.mxu0 %vm81_vm0, %v1679_v40  ;;  %v4158_v39 = vld [vmem:[%s5890_s23 + $0x30] sm:$0xff] }
 0xd1d   :  { %v1680_v41 = vadd.f32 %v4147_v36, %v1672_v13  ;;  %v4156_v36 = vld [vmem:[%s5890_s23 + $0x20] sm:$0xff] }
 0xd1e   :  { %v4735_v38 = vpack.c.bf16 %v4157_v37, %v4156_v36 }
 0xd1f   :  { %4542 = vmatmul.mubr.msk.f32.vlgmr.msra.gmra.mrb[20].mxu0 %vm81_vm0, %v1680_v41 }
 0xd20   :  { %4722 = vmatpush3.bf16.msra.mxu0 %v4719_v44  ;;  %4736 = vmatprep.subr.bf16.mxu1 %v4735_v38 }
 0xd21   :  { %4724 = vmatprep.subr.bf16.mxu0 %v4723_v47  ;;  %4738 = vmatpush3.bf16.msra.mxu1 %v4735_v38 }
 0xd24   :  { %4726 = vmatpush3.bf16.msra.mxu0 %v4723_v47 }
 0xd25   :  { %4728 = vmatprep.subr.bf16.mxu0 %v4727_v51 }
 0xd28   :  { %4730 = vmatpush3.bf16.msra.mxu0 %v4727_v51 }
 0xd29   :  { %4732 = vmatprep.subr.bf16.mxu0 %v4731_v55 }
 0xd2c   :  { %4734 = vmatpush3.bf16.msra.mxu0 %v4731_v55 }
 0xd2d   :  { %4584 = vmatprep.subr.mxu0 %v4959_v8 }
 0xdf2   :  { %v4543_v57 = vpop.f32.mrb[20].mxu0 }
 0xdf3   :  { %v1770_v58 = vadd.f32 %v4543_v57, %v4148_v56  ;;  %v1764_v59 = vpop.f32.mrb[21].mxu0 }
 0xdf4   :  { %v1765_v60 = vadd.f32 %v4148_v56, %v1764_v59  ;;  %v4161_v59 = vld [vmem:[%s5892_s22 + $0x1] ss:$0 sm:$0xff]  ;;  %s5895_s22 = smov 64  }
 0xdf5   :  { %v1776_v61 = vmul.f32 0.044715, %v1770_v58  ;;  %v1774_v15 = vmul.f32 0.5, %v1770_v58 }
 0xdf6   :  { %v1775_v62 = vmul.f32 0.044715, %v1765_v60  ;;  %v1773_v11 = vmul.f32 0.5, %v1765_v60 }
 0xdf7   :  { %v1778_v63 = vmul.f32 %v1776_v61, %v1770_v58 }
 0xdf8   :  { %v1777_v50 = vmul.f32 %v1775_v62, %v1765_v60 }
 0xdf9   :  { %v1780_v0 = vmul.f32 %v1778_v63, %v1770_v58 }
 0xdfa   :  { %v1779_v1 = vmul.f32 %v1777_v50, %v1765_v60 }
 0xdfb   :  { %v1782_v52 = vadd.f32 %v1780_v0, %v1770_v58 }
 0xdfc   :  { %v1781_v2 = vadd.f32 %v1779_v1, %v1765_v60 }
 0xdfd   :  { %v1784_v3 = vmul.f32 0.7978845, %v1782_v52 }
 0xdfe   :  { %v1783_v4 = vmul.f32 0.7978845, %v1781_v2 }
 0xdff   :  { %4869 = vtanh.f32 %v1784_v3 }
 0xe00   :  { %4871 = vtanh.f32 %v1783_v4 }
 0xe09   :  { %v4870_v6 = vpop.eup %4869 }
 0xe0a   :  { %v4872_v9 = vpop.eup %4871  ;;  %v1788_v10 = vadd.f32 1.0, %v4870_v6 }
 0xe0b   :  { %v1787_v14 = vadd.f32 1.0, %v4872_v9 }
 0xe0c   :  { %v1790_v18 = vmul.f32 %v1788_v10, %v1774_v15 }
 0xe0d   :  { %v1789_v16 = vmul.f32 %v1787_v14, %v1773_v11 }
 0xe0f   :  { %4560 = vmatprep.mubr.msk.f32.mxu0 %vm1806_vm5, %v1789_v16 }
 0xe10   :  { %4561 = vmatmul.mubr.msk.f32.vlgmr.msra.gmra.mrb[22].mxu0 %vm1806_vm5, %v1790_v18 }
 0xe11   :  { %4586 = vmatprep.mubr.msk.f32.mxu0 %vm4960_vm1, %v4959_v8 }
 0xee3   :  { %v4562_v20 = vpop.f32.mrb[22].mxu0 }
 0xee4   :  { %v1885_v21 = vadd.f32 %v4562_v20, %v4151_v19  ;;  %v1879_v7 = vpop.f32.mrb[23].mxu0 }
 0xee5   :  { %v1880_v5 = vadd.f32 %v4151_v19, %v1879_v7 }
 0xee6   :  { %v1889_v23 = vadd.f32 %v1885_v21, %v1680_v41 }
 0xee7   :  { %v1888_v24 = vadd.f32 %v1880_v5, %v1679_v40  ;;  %v4159_v40 = vld [vmem:[%s5890_s23 + $0x38] sm:$0xff]  ;;  %s5900_s23 = smov 112  }
 0xee8   :  { %v1895_v25 = vsel %vm81_vm0, %v1889_v23, 0.0  ;;  %v4739_v13 = vpack.c.bf16 %v4159_v40, %v4158_v39 }
 0xee9   :  { %1896 = vadd.xlane.f32.xlu0 %v1895_v25  ;;  %v1892_v26 = vsel %vm81_vm0, %v1888_v24, 0.0 }
 0xeea   :  { %1893 = vadd.xlane.f32.xlu1 %v1892_v26  ;;  %4740 = vmatprep.subr.bf16.mxu1 %v4739_v13 }
 0xeeb   :  { %4742 = vmatpush3.bf16.msra.mxu1 %v4739_v13  ;;  %v5468_v13 = vld [vmem:[%s5893_s3] ss:$0 sm:$0xff] }
 0xeec   :  { %4574 = vmatprep.subr.mxu1 %v4959_v8 }
 0xf76   :  { %v1897_v27 = vpop.xlane.xlu0 %1896 }
 0xf77   :  { %v1899_v28 = vmul.f32 0.03125, %v1897_v27  ;;  %v1894_v30 = vpop.xlane.xlu1 %1893 }
 0xf78   :  { %v1898_v32 = vmul.f32 0.03125, %v1894_v30 }
 0xf79   :  { %v1901_v12 = vsub.f32 %v1889_v23, %v1899_v28 }
 0xf7a   :  { %v1900_v33 = vsub.f32 %v1888_v24, %v1898_v32 }
 0xf7b   :  { %v1903_v31 = vmul.f32 %v1901_v12, %v1901_v12 }
 0xf7c   :  { %v1902_v29 = vmul.f32 %v1900_v33, %v1900_v33 }
 0xf7d   :  { %v1907_v34 = vsel %vm81_vm0, %v1903_v31, 0.0 }
 0xf7e   :  { %1908 = vadd.xlane.f32.xlu0 %v1907_v34  ;;  %v1904_v35 = vsel %vm81_vm0, %v1902_v29, 0.0 }
 0xf7f   :  { %1905 = vadd.xlane.f32.xlu1 %v1904_v35 }
0x100b   :  { %v1909_v41 = vpop.xlane.xlu0 %1908 }
0x100c   :  { %v1911_v42 = vmul.f32 0.03125, %v1909_v41  ;;  %v1906_v43 = vpop.xlane.xlu1 %1905 }
0x100d   :  { %v1910_v44 = vmul.f32 0.03125, %v1906_v43 }
0x100e   :  { %v1913_v45 = vadd.f32 1e-12, %v1911_v42 }
0x100f   :  { %v1912_v46 = vadd.f32 1e-12, %v1910_v44 }
0x1010   :  { %4873 = vrsqrt.f32 %v1913_v45 }
0x1011   :  { %4875 = vrsqrt.f32 %v1912_v46  ;;  %v5475_v46 = vld [vmem:[%s5893_s3 + $0x1] ss:$0 sm:$0xff]  ;;  %s5901_s3 = smov 48  }
0x101a   :  { %v4874_v47 = vpop.eup %4873 }
0x101b   :  { %v4876_v49 = vpop.eup %4875  ;;  %v1917_v51 = vmul.f32 %v4874_v47, %v1901_v12 }
0x101c   :  { %v1916_v53 = vmul.f32 %v4876_v49, %v1900_v33 }
0x101d   :  { %v1925_v55 = vmul.f32 %v4154_v48, %v1917_v51 }
0x101e   :  { %v1924_v56 = vmul.f32 %v4154_v48, %v1916_v53 }
0x101f   :  { %v5394_v58 = vadd.f32 %v4155_v54, %v1925_v55 }
0x1020   :  { %v5392_v57 = vadd.f32 %v4155_v54, %v1924_v56 }
0x1022   :  { %4571 = vmatprep.mubr.msk.f32.mxu1 %vm81_vm0, %v5392_v57 }
0x1023   :  { %4572 = vmatmul.mubr.msk.f32.vlgmr.msra.gmra.mrb[16].mxu1 %vm81_vm0, %v5394_v58 }
0x1024   :  { %4576 = vmatprep.mubr.msk.f32.mxu1 %vm4960_vm1, %v4959_v8 }
0x10f6   :  { %v4573_v60 = vpop.f32.mrb[16].mxu1 }
0x10f7   :  { %v5405_v61 = vadd.f32 %v4573_v60, %v4161_v59  ;;  %v2019_v62 = vpop.f32.mrb[17].mxu1 }
0x10f8   :  { %v5407_v63 = vadd.f32 %v4161_v59, %v2019_v62 }
0x10f9   :  { %2106 = vrot.lane.b32.xlu0 %v5405_v61, %s4961_s24 }
0x10fa   :  { %2029 = vrot.lane.b32.xlu1 %v5407_v63, %s4961_s24  ;;  %s5896_s24 = smov 88  }
0x116b   :  { %v2107_v0 = vpop.permute.xlu0 %2106 }
0x116c   :  { %v2030_v50 = vpop.permute.xlu1 %2029 }
0x116d   :  { %4575 = vmatpush3.xpose.msk.msra.mxu1 %vm166_vm2, %v2030_v50 }
0x116e   :  { %4579 = vmatprep.subr.mxu1 %v4959_v8 }
0x1170   :  { %4577 = vmatmul.mubr.msk.f32.vlgmr.msra.gmra.mrb[18].mxu1 %vm166_vm2, %v5407_v63 }
0x1171   :  { %4580 = vmatpush3.xpose.msk.msra.mxu1 %vm166_vm2, %v2107_v0  ;;  %4581 = vmatprep.mubr.msk.f32.mxu1 %vm4960_vm1, %v4959_v8 }
0x1172   :  { %4589 = vmatprep.subr.mxu1 %v4959_v8 }
0x1174   :  { %4582 = vmatmul.mubr.msk.f32.vlgmr.msra.gmra.mrb[20].mxu1 %vm166_vm2, %v5405_v61 }
0x1175   :  { %4591 = vmatprep.mubr.msk.f32.mxu1 %vm4960_vm1, %v4959_v8 }
0x1243   :  { %v2101_v1 = vpop.f32.mrb[18].mxu1 }
0x1244   :  { %v2182_v52 = vmul.f32 0.35355338, %v2101_v1  ;;  %v4578_v2 = vpop.f32.mrb[19].mxu1 }
0x1246   :  { %v2184_v3 = vadd.f32 %v5140_v17, %v2182_v52 }
0x1247   :  { %v2178_v4 = vpop.f32.mrb[20].mxu1 }
0x1248   :  { %v2183_v6 = vmul.f32 0.35355338, %v2178_v4  ;;  %v4583_v9 = vpop.f32.mrb[21].mxu1  ;;  %v2186_v10 = vsel %vm166_vm2, %v2184_v3, -inf }
0x1249   :  { %2187 = vmax.xlane.f32.xlu1 %v2186_v10 }
0x124a   :  { %v2185_v11 = vadd.f32 %v5146_v22, %v2183_v6 }
0x124c   :  { %v2189_v14 = vsel %vm166_vm2, %v2185_v11, -inf }
0x124d   :  { %2190 = vmax.xlane.f32.xlu0 %v2189_v14 }
0x125a   :  { %2208 = vrot.lane.b32.xlu1 %v5407_v63, %s5895_s22 }
0x125e   :  { %2362 = vrot.lane.b32.xlu1 %v5407_v63, %s5896_s24 }
0x1262   :  { %2440 = vrot.lane.b32.xlu1 %v5405_v61, %s5896_s24  ;;  %s5906_s24 = smov 16  }
0x1263   :  { %2284 = vrot.lane.b32.xlu0 %v5405_v61, %s5895_s22  ;;  %s5905_s22 = smov 8  }
0x12d6   :  { %v2188_v17 = vpop.xlane.xlu1 %2187 }
0x12d7   :  { %v2192_v15 = vsub.f32 %v2184_v3, %v2188_v17 }
0x12d9   :  { %v2194_v16 = vmul.f32 1.442695, %v2192_v15 }
0x12da   :  { %v2209_v18 = vpop.permute.xlu1 %2208  ;;  %v2191_v22 = vpop.xlane.xlu0 %2190 }
0x12db   :  { %4877 = vpow2.f32 %v2194_v16  ;;  %v2193_v19 = vsub.f32 %v2185_v11, %v2191_v22  ;;  %4585 = vmatpush3.msra.mxu0 %v2209_v18 }
0x12dc   :  { %4594 = vmatprep.subr.mxu0 %v4959_v8 }
0x12dd   :  { %v2196_v20 = vmul.f32 1.442695, %v2193_v19 }
0x12de   :  { %v2285_v21 = vpop.permute.xlu0 %2284  ;;  %v2363_v25 = vpop.permute.xlu1 %2362 }
0x12df   :  { %4879 = vpow2.f32 %v2196_v20  ;;  %4590 = vmatpush3.msra.mxu1 %v2285_v21 }
0x12e0   :  { %4599 = vmatprep.subr.mxu1 %v4959_v8 }
0x12e2   :  { %v2441_v26 = vpop.permute.xlu1 %2440 }
0x12e5   :  { %v4878_v7 = vpop.eup %4877 }
0x12e6   :  { %v2198_v5 = vsel %vm166_vm2, %v4878_v7, 0.0 }
0x12e7   :  { %2199 = vadd.xlane.f32.xlu1 %v2198_v5 }
0x12e9   :  { %v4880_v23 = vpop.eup %4879 }
0x12ea   :  { %v2201_v24 = vsel %vm166_vm2, %v4880_v23, 0.0 }
0x12eb   :  { %2202 = vadd.xlane.f32.xlu0 %v2201_v24 }
0x12f8   :  { %2438 = vrot.lane.b32.xlu1 %v5405_v61, %s5897_s30 }
0x1301   :  { %2360 = vrot.lane.b32.xlu0 %v5407_v63, %s5897_s30  ;;  %s4975_s30 = smov [#allocation2]  }
0x1374   :  { %v2200_v27 = vpop.xlane.xlu1 %2199 }
0x1375   :  { %4881 = vrcp.f32 %v2200_v27 }
0x1378   :  { %v2203_v28 = vpop.xlane.xlu0 %2202  ;;  %v2439_v29 = vpop.permute.xlu1 %2438 }
0x1379   :  { %4883 = vrcp.f32 %v2203_v28 }
0x137c   :  { %v2361_v31 = vpop.permute.xlu0 %2360 }
0x137f   :  { %v4882_v30 = vpop.eup %4881 }
0x1380   :  { %v2206_v32 = vmul.f32 %v4882_v30, %v4878_v7 }
0x1382   :  { %4587 = vmatmul.mubr.msk.f32.vlgmr.msra.gmra.mrb[24].mxu0 %vm166_vm2, %v2206_v32 }
0x1383   :  { %v4884_v12 = vpop.eup %4883  ;;  %4595 = vmatpush3.xpose.msk.msra.mxu0 %vm166_vm2, %v2363_v25  ;;  %4596 = vmatprep.mubr.msk.f32.mxu0 %vm4960_vm1, %v4959_v8 }
0x1384   :  { %v2207_v33 = vmul.f32 %v4884_v12, %v4880_v23  ;;  %4604 = vmatprep.subr.mxu0 %v4959_v8 }
0x1386   :  { %4592 = vmatmul.mubr.msk.f32.vlgmr.msra.gmra.mrb[22].mxu1 %vm166_vm2, %v2207_v33  ;;  %4597 = vmatmul.mubr.msk.f32.vlgmr.msra.gmra.mrb[26].mxu0 %vm166_vm2, %v2361_v31 }
0x1387   :  { %4600 = vmatpush3.xpose.msk.msra.mxu1 %vm166_vm2, %v2441_v26  ;;  %4601 = vmatprep.mubr.msk.f32.mxu1 %vm4960_vm1, %v4959_v8 }
0x1388   :  { %4609 = vmatprep.subr.mxu1 %v4959_v8  ;;  %4606 = vmatprep.mubr.msk.f32.mxu0 %vm4960_vm1, %v4959_v8 }
0x138a   :  { %4602 = vmatmul.mubr.msk.f32.vlgmr.msra.gmra.mrb[24].mxu1 %vm166_vm2, %v2439_v29 }
0x138b   :  { %4611 = vmatprep.mubr.msk.f32.mxu1 %vm4960_vm1, %v4959_v8 }
0x1455   :  { %v5461_v34 = vpop.f32.mrb[24].mxu0 }
0x1456   :  { %v4588_v35 = vpop.f32.mrb[25].mxu0 }
0x1459   :  { %v5463_v36 = vpop.f32.mrb[22].mxu1  ;;  %v2434_v37 = vpop.f32.mrb[26].mxu0 }
0x145a   :  { %v2516_v38 = vmul.f32 0.35355338, %v2434_v37  ;;  %v4593_v39 = vpop.f32.mrb[23].mxu1  ;;  %v4598_v40 = vpop.f32.mrb[27].mxu0 }
0x145c   :  { %v2518_v41 = vadd.f32 %v5468_v13, %v2516_v38 }
0x145d   :  { %v2512_v42 = vpop.f32.mrb[24].mxu1 }
0x145e   :  { %v2517_v43 = vmul.f32 0.35355338, %v2512_v42  ;;  %v4603_v44 = vpop.f32.mrb[25].mxu1  ;;  %v2520_v45 = vsel %vm166_vm2, %v2518_v41, -inf }
0x145f   :  { %2521 = vmax.xlane.f32.xlu0 %v2520_v45 }
0x1460   :  { %v2519_v47 = vadd.f32 %v5475_v46, %v2517_v43 }
0x1462   :  { %v2523_v48 = vsel %vm166_vm2, %v2519_v47, -inf }
0x1463   :  { %2524 = vmax.xlane.f32.xlu1 %v2523_v48 }
0x1474   :  { %2542 = vrot.lane.b32.xlu1 %v5407_v63, %s5898_s25 }
0x1475   :  { %2618 = vrot.lane.b32.xlu0 %v5405_v61, %s5898_s25 }
0x1478   :  { %2696 = vrot.lane.b32.xlu1 %v5407_v63, %s5899_s2 }
0x147c   :  { %2774 = vrot.lane.b32.xlu1 %v5405_v61, %s5899_s2 }
0x1480   :  { %2772 = vrot.lane.b32.xlu1 %v5405_v61, %s5900_s23 }
0x14ec   :  { %v2522_v49 = vpop.xlane.xlu0 %2521 }
0x14ed   :  { %v2526_v51 = vsub.f32 %v2518_v41, %v2522_v49 }
0x14ef   :  { %v2528_v53 = vmul.f32 1.442695, %v2526_v51 }
0x14f0   :  { %v2619_v54 = vpop.permute.xlu0 %2618  ;;  %v2525_v55 = vpop.xlane.xlu1 %2524 }
0x14f1   :  { %4885 = vpow2.f32 %v2528_v53  ;;  %v2527_v56 = vsub.f32 %v2519_v47, %v2525_v55  ;;  %4610 = vmatpush3.msra.mxu1 %v2619_v54 }
0x14f2   :  { %4619 = vmatprep.subr.mxu1 %v4959_v8 }
0x14f3   :  { %v2530_v59 = vmul.f32 1.442695, %v2527_v56 }
0x14f4   :  { %v2543_v60 = vpop.permute.xlu1 %2542 }
0x14f5   :  { %4887 = vpow2.f32 %v2530_v59  ;;  %4605 = vmatpush3.msra.mxu0 %v2543_v60 }
0x14f6   :  { %4614 = vmatprep.subr.mxu0 %v4959_v8 }
0x14f8   :  { %v2697_v3 = vpop.permute.xlu1 %2696 }
0x14fb   :  { %v4886_v62 = vpop.eup %4885 }
0x14fc   :  { %v2532_v50 = vsel %vm166_vm2, %v4886_v62, 0.0  ;;  %v2775_v10 = vpop.permute.xlu1 %2774 }
0x14fd   :  { %2533 = vadd.xlane.f32.xlu0 %v2532_v50 }
0x14ff   :  { %v4888_v0 = vpop.eup %4887 }
0x1500   :  { %v2535_v1 = vsel %vm166_vm2, %v4888_v0, 0.0  ;;  %v2773_v17 = vpop.permute.xlu1 %2772 }
0x1501   :  { %2536 = vadd.xlane.f32.xlu0 %v2535_v1 }
0x1517   :  { %2694 = vrot.lane.b32.xlu0 %v5407_v63, %s5900_s23 }
0x158a   :  { %v2534_v52 = vpop.xlane.xlu0 %2533 }
0x158b   :  { %4889 = vrcp.f32 %v2534_v52 }
0x158e   :  { %v2537_v2 = vpop.xlane.xlu0 %2536 }
0x158f   :  { %4891 = vrcp.f32 %v2537_v2 }
0x1592   :  { %v2695_v14 = vpop.permute.xlu0 %2694 }
0x1595   :  { %v4890_v4 = vpop.eup %4889 }
0x1596   :  { %v2540_v6 = vmul.f32 %v4890_v4, %v4886_v62 }
0x1598   :  { %4607 = vmatmul.mubr.msk.f32.vlgmr.msra.gmra.mrb[28].mxu0 %vm166_vm2, %v2540_v6 }
0x1599   :  { %v4892_v9 = vpop.eup %4891  ;;  %4615 = vmatpush3.xpose.msk.msra.mxu0 %vm166_vm2, %v2697_v3  ;;  %4616 = vmatprep.mubr.msk.f32.mxu0 %vm4960_vm1, %v4959_v8 }
0x159a   :  { %v2541_v11 = vmul.f32 %v4892_v9, %v4888_v0  ;;  %4624 = vmatprep.subr.mxu0 %v4959_v8 }
0x159c   :  { %4612 = vmatmul.mubr.msk.f32.vlgmr.msra.gmra.mrb[26].mxu1 %vm166_vm2, %v2541_v11  ;;  %4617 = vmatmul.mubr.msk.f32.vlgmr.msra.gmra.mrb[30].mxu0 %vm166_vm2, %v2695_v14 }
0x159d   :  { %4620 = vmatpush3.xpose.msk.msra.mxu1 %vm166_vm2, %v2775_v10  ;;  %4621 = vmatprep.mubr.msk.f32.mxu1 %vm4960_vm1, %v4959_v8 }
0x159e   :  { %4629 = vmatprep.subr.mxu1 %v4959_v8  ;;  %4626 = vmatprep.mubr.msk.f32.mxu0 %vm4960_vm1, %v4959_v8 }
0x15a0   :  { %4622 = vmatmul.mubr.msk.f32.vlgmr.msra.gmra.mrb[28].mxu1 %vm166_vm2, %v2773_v17 }
0x15a1   :  { %4631 = vmatprep.mubr.msk.f32.mxu1 %vm4960_vm1, %v4959_v8 }
0x166b   :  { %v5511_v15 = vpop.f32.mrb[28].mxu0 }
0x166c   :  { %v4608_v16 = vpop.f32.mrb[29].mxu0 }
0x166f   :  { %v5513_v18 = vpop.f32.mrb[26].mxu1  ;;  %v2768_v22 = vpop.f32.mrb[30].mxu0 }
0x1670   :  { %v2850_v19 = vmul.f32 0.35355338, %v2768_v22  ;;  %v4613_v20 = vpop.f32.mrb[27].mxu1  ;;  %v4618_v21 = vpop.f32.mrb[31].mxu0 }
0x1672   :  { %v2852_v7 = vadd.f32 %v5468_v13, %v2850_v19 }
0x1673   :  { %v2846_v5 = vpop.f32.mrb[28].mxu1 }
0x1674   :  { %v2851_v23 = vmul.f32 0.35355338, %v2846_v5  ;;  %v4623_v24 = vpop.f32.mrb[29].mxu1  ;;  %v2854_v25 = vsel %vm166_vm2, %v2852_v7, -inf }
0x1675   :  { %2855 = vmax.xlane.f32.xlu0 %v2854_v25  ;;  %v4189_v24 = vld [vmem:[%s5894_s1 + $0x28] sm:$0xff] }
0x1676   :  { %v2853_v26 = vadd.f32 %v5475_v46, %v2851_v23 }
0x1678   :  { %v2857_v27 = vsel %vm166_vm2, %v2853_v26, -inf }
0x1679   :  { %2858 = vmax.xlane.f32.xlu1 %v2857_v27  ;;  %v4191_v27 = vld [vmem:[%s5894_s1 + $0x38] sm:$0xff] }
0x168a   :  { %2876 = vrot.lane.b32.xlu1 %v5407_v63, %s5901_s3 }
0x168b   :  { %2952 = vrot.lane.b32.xlu0 %v5405_v61, %s5901_s3  ;;  %s5907_s3 = smov 24  }
0x168e   :  { %3030 = vrot.lane.b32.xlu1 %v5407_v63, %s5902_s26 }
0x1692   :  { %3108 = vrot.lane.b32.xlu1 %v5405_v61, %s5902_s26 }
0x1696   :  { %3106 = vrot.lane.b32.xlu1 %v5405_v61, %s5903_s27 }
0x1702   :  { %v2856_v28 = vpop.xlane.xlu0 %2855 }
0x1703   :  { %v2860_v30 = vsub.f32 %v2852_v7, %v2856_v28 }
0x1705   :  { %v2862_v32 = vmul.f32 1.442695, %v2860_v30 }
0x1706   :  { %v2953_v12 = vpop.permute.xlu0 %2952  ;;  %v2859_v33 = vpop.xlane.xlu1 %2858 }
0x1707   :  { %4893 = vpow2.f32 %v2862_v32  ;;  %v2861_v31 = vsub.f32 %v2853_v26, %v2859_v33  ;;  %4630 = vmatpush3.msra.mxu1 %v2953_v12  ;;  %v4190_v26 = vld [vmem:[%s5894_s1 + $0x30] sm:$0xff] }
0x1708   :  { %4639 = vmatprep.subr.mxu1 %v4959_v8  ;;  %v4747_v28 = vpack.c.bf16 %v4191_v27, %v4190_v26  ;;  %v4225_v26 = vld [vmem:[%s5845_s12 + $0x68] sm:$0xff]  ;;  %v4227_v27 = vld [vmem:[%s5845_s12 + $0x78] sm:$0xff] }
0x1709   :  { %v2864_v29 = vmul.f32 1.442695, %v2861_v31 }
0x170a   :  { %v2877_v35 = vpop.permute.xlu1 %2876 }
0x170b   :  { %4895 = vpow2.f32 %v2864_v29  ;;  %4625 = vmatpush3.msra.mxu0 %v2877_v35 }
0x170c   :  { %4634 = vmatprep.subr.mxu0 %v4959_v8 }
0x170e   :  { %v3031_v43 = vpop.permute.xlu1 %3030 }
0x1711   :  { %v4894_v37 = vpop.eup %4893 }
0x1712   :  { %v2866_v38 = vsel %vm166_vm2, %v4894_v37, 0.0  ;;  %v3109_v48 = vpop.permute.xlu1 %3108 }
0x1713   :  { %2867 = vadd.xlane.f32.xlu0 %v2866_v38 }
0x1715   :  { %v4896_v39 = vpop.eup %4895 }
0x1716   :  { %v2869_v40 = vsel %vm166_vm2, %v4896_v39, 0.0  ;;  %v3107_v53 = vpop.permute.xlu1 %3106 }
0x1717   :  { %2870 = vadd.xlane.f32.xlu0 %v2869_v40 }
0x172d   :  { %3028 = vrot.lane.b32.xlu0 %v5407_v63, %s5903_s27 }
0x17a0   :  { %v2868_v41 = vpop.xlane.xlu0 %2867 }
0x17a1   :  { %4897 = vrcp.f32 %v2868_v41 }
0x17a4   :  { %v2871_v42 = vpop.xlane.xlu0 %2870 }
0x17a5   :  { %4899 = vrcp.f32 %v2871_v42 }
0x17a8   :  { %v3029_v51 = vpop.permute.xlu0 %3028 }
0x17ab   :  { %v4898_v44 = vpop.eup %4897 }
0x17ac   :  { %v2874_v45 = vmul.f32 %v4898_v44, %v4894_v37 }
0x17ae   :  { %4627 = vmatmul.mubr.msk.f32.vlgmr.msra.gmra.mrb[32].mxu0 %vm166_vm2, %v2874_v45 }
0x17af   :  { %v4900_v47 = vpop.eup %4899  ;;  %4635 = vmatpush3.xpose.msk.msra.mxu0 %vm166_vm2, %v3031_v43  ;;  %4636 = vmatprep.mubr.msk.f32.mxu0 %vm4960_vm1, %v4959_v8 }
0x17b0   :  { %v2875_v49 = vmul.f32 %v4900_v47, %v4896_v39  ;;  %4644 = vmatprep.subr.mxu0 %v4959_v8 }
0x17b2   :  { %4632 = vmatmul.mubr.msk.f32.vlgmr.msra.gmra.mrb[30].mxu1 %vm166_vm2, %v2875_v49  ;;  %4637 = vmatmul.mubr.msk.f32.vlgmr.msra.gmra.mrb[34].mxu0 %vm166_vm2, %v3029_v51 }
0x17b3   :  { %4640 = vmatpush3.xpose.msk.msra.mxu1 %vm166_vm2, %v3109_v48  ;;  %4641 = vmatprep.mubr.msk.f32.mxu1 %vm4960_vm1, %v4959_v8 }
0x17b4   :  { %4649 = vmatprep.subr.mxu1 %v4959_v8  ;;  %4646 = vmatprep.mubr.msk.f32.mxu0 %vm4960_vm1, %v4959_v8 }
0x17b6   :  { %4642 = vmatmul.mubr.msk.f32.vlgmr.msra.gmra.mrb[32].mxu1 %vm166_vm2, %v3107_v53 }
0x17b7   :  { %4651 = vmatprep.mubr.msk.f32.mxu1 %vm4960_vm1, %v4959_v8 }
0x1881   :  { %v2948_v54 = vpop.f32.mrb[32].mxu0 }
0x1882   :  { %v4628_v55 = vpop.f32.mrb[33].mxu0 }
0x1885   :  { %v3024_v56 = vpop.f32.mrb[30].mxu1  ;;  %v3102_v59 = vpop.f32.mrb[34].mxu0 }
0x1886   :  { %v3184_v60 = vmul.f32 0.35355338, %v3102_v59  ;;  %v4633_v62 = vpop.f32.mrb[31].mxu1  ;;  %v4638_v50 = vpop.f32.mrb[35].mxu0 }
0x1888   :  { %v3186_v0 = vadd.f32 %v5468_v13, %v3184_v60 }
0x1889   :  { %v3180_v1 = vpop.f32.mrb[32].mxu1 }
0x188a   :  { %v3185_v52 = vmul.f32 0.35355338, %v3180_v1  ;;  %v4643_v2 = vpop.f32.mrb[33].mxu1  ;;  %v3188_v3 = vsel %vm166_vm2, %v3186_v0, -inf }
0x188b   :  { %3189 = vmax.xlane.f32.xlu0 %v3188_v3  ;;  %v4201_v3 = vld [vmem:[%s5841_s8 + $0x28] sm:$0xff] }
0x188c   :  { %v3187_v4 = vadd.f32 %v5475_v46, %v3185_v52 }
0x188e   :  { %v3191_v6 = vsel %vm166_vm2, %v3187_v4, -inf }
0x188f   :  { %3192 = vmax.xlane.f32.xlu1 %v3191_v6  ;;  %v4202_v6 = vld [vmem:[%s5841_s8 + $0x30] sm:$0xff] }
0x18a0   :  { %3210 = vrot.lane.b32.xlu1 %v5407_v63, %s5904_s29 }
0x18a4   :  { %3364 = vrot.lane.b32.xlu1 %v5511_v15, %s5905_s22 }
0x18a8   :  { %3366 = vrot.lane.b32.xlu1 %v5513_v18, %s5905_s22 }
0x18ac   :  { %3374 = vrot.lane.b32.xlu1 %v3024_v56, %s5906_s24 }
0x1918   :  { %v3190_v13 = vpop.xlane.xlu0 %3189 }
0x1919   :  { %v3194_v9 = vsub.f32 %v3186_v0, %v3190_v13  ;;  %v4203_v13 = vld [vmem:[%s5841_s8 + $0x38] sm:$0xff] }
0x191b   :  { %v3196_v10 = vmul.f32 1.442695, %v3194_v9  ;;  %v4755_v9 = vpack.c.bf16 %v4203_v13, %v4202_v6  ;;  %v4212_v6 = vld [vmem:[%s5843_s10 + $0x60] sm:$0xff]  ;;  %v4213_v13 = vld [vmem:[%s5843_s10 + $0x68] sm:$0xff] }
0x191c   :  { %v3193_v11 = vpop.xlane.xlu1 %3192 }
0x191d   :  { %4901 = vpow2.f32 %v3196_v10  ;;  %v3195_v46 = vsub.f32 %v3187_v4, %v3193_v11  ;;  %v4221_v10 = vld [vmem:[%s5845_s12 + $0x48] sm:$0xff]  ;;  %v4223_v11 = vld [vmem:[%s5845_s12 + $0x58] sm:$0xff] }
0x191f   :  { %v3198_v14 = vmul.f32 1.442695, %v3195_v46  ;;  %v4775_v46 = vpack.c.bf16 %v4223_v11, %v4221_v10  ;;  %v4767_v10 = vpack.c.bf16 %v4213_v13, %v4212_v6  ;;  %v4240_v11 = vld [vmem:[%s5847_s14 + $0x148] sm:$0xff] }
0x1920   :  { %v3211_v17 = vpop.permute.xlu1 %3210 }
0x1921   :  { %4903 = vpow2.f32 %v3198_v14  ;;  %4645 = vmatpush3.msra.mxu0 %v3211_v17 }
0x1924   :  { %v3365_v31 = vpop.permute.xlu1 %3364 }
0x1925   :  { %v3386_v37 = vsel %vm166_vm2, %v5461_v34, %v3365_v31  ;;  %v4193_v34 = vld [vmem:[%s5838_s5 + $0x1] ss:$0 sm:$0xff]  ;;  %v4226_v31 = vld [vmem:[%s5845_s12 + $0x70] sm:$0xff] }
0x1927   :  { %v4902_v16 = vpop.eup %4901 }
0x1928   :  { %v3200_v63 = vsel %vm166_vm2, %v4902_v16, 0.0  ;;  %v3367_v29 = vpop.permute.xlu1 %3366 }
0x1929   :  { %3201 = vadd.xlane.f32.xlu0 %v3200_v63  ;;  %v3387_v42 = vsel %vm166_vm2, %v5463_v36, %v3367_v29 }
0x192b   :  { %v4904_v15 = vpop.eup %4903 }
0x192c   :  { %v3203_v22 = vsel %vm166_vm2, %v4904_v15, 0.0  ;;  %v3375_v38 = vpop.permute.xlu1 %3374 }
0x192d   :  { %3204 = vadd.xlane.f32.xlu0 %v3203_v22  ;;  %v3389_v43 = vsel %vm1536_vm3, %v3387_v42, %v3375_v38  ;;  %v4250_v42 = vld [vmem:[%s5847_s14 + $0x198] sm:$0xff] }
0x1943   :  { %3286 = vrot.lane.b32.xlu0 %v5405_v61, %s5904_s29  ;;  %v4188_v61 = vld [vmem:[%s5894_s1 + $0x20] sm:$0xff] }
0x1944   :  { %v4743_v25 = vpack.c.bf16 %v4189_v24, %v4188_v61  ;;  %v4220_v24 = vld [vmem:[%s5845_s12 + $0x40] sm:$0xff] }
0x1946   :  { %4744 = vmatprep.subr.bf16.mxu0 %v4743_v25 }
0x1947   :  { %3372 = vrot.lane.b32.xlu0 %v2948_v54, %s5906_s24 }
0x19b6   :  { %v3202_v18 = vpop.xlane.xlu0 %3201 }
0x19b7   :  { %4905 = vrcp.f32 %v3202_v18 }
0x19ba   :  { %v3205_v19 = vpop.xlane.xlu0 %3204 }
0x19bb   :  { %4907 = vrcp.f32 %v3205_v19  ;;  %v4198_v19 = vld [vmem:[%s5839_s6 + $0x1] ss:$0 sm:$0xff]  ;;  %s4103_s6 = sshll.u32 %s4975_s30, 4  ;;  %s4104_s6 = int_to_ptr.vmem [resolvable:$true] %s4103_s6 }
0x19bc   :  { %s4935_s0 = scalar_lea.vmem %s4104_s6, 512  ;;  %p4940_p1 = scmp.lt.s32.totalorder %s4104_s6, %s4104_s6 }
0x19bd   :  { %p4936_p0 = scmp.ne.s32.totalorder %s4104_s6, %s4935_s0  ;;  %p4941_p2 = scmp.lt.s32.totalorder %s4935_s0, %s4935_s0 }
0x19be   :  { %v3287_v20 = vpop.permute.xlu0 %3286 }
0x19bf   :  { %4650 = vmatpush3.msra.mxu1 %v3287_v20  ;;  %p4942_p3 = por %p4941_p2, %p4940_p1 }
0x19c1   :  { %v4906_v21 = vpop.eup %4905  ;;  %p4943_p4 = pnand %p4942_p3, %p4936_p0 }
0x19c2   :  { %v3208_v7 = vmul.f32 %v4906_v21, %v4902_v16  ;;  %v3373_v35 = vpop.permute.xlu0 %3372  ;;  %v4199_v21 = vld [vmem:[%s5840_s7 + $0x1] ss:$0 sm:$0xff] }
0x19c3   :  { %v3388_v39 = vsel %vm1536_vm3, %v3386_v37, %v3373_v35  ;;  %v4247_v35 = vld [vmem:[%s5847_s14 + $0x180] sm:$0xff]  ;;  %v4248_v37 = vld [vmem:[%s5847_s14 + $0x188] sm:$0xff] }
0x19c4   :  { %4647 = vmatmul.mubr.msk.f32.vlgmr.msra.gmra.mrb[36].mxu0 %vm166_vm2, %v3208_v7  ;;  %v4783_v38 = vpack.c.bf16 %v4248_v37, %v4247_v35  ;;  %v4205_v35 = vld [vmem:[%s5842_s9 + $0x1] ss:$0 sm:$0xff] }
0x19c5   :  { %v4908_v5 = vpop.eup %4907  ;;  %4746 = vmatpush3.bf16.msra.mxu0 %v4743_v25  ;;  %v4222_v25 = vld [vmem:[%s5845_s12 + $0x50] sm:$0xff] }
0x19c6   :  { %v3209_v23 = vmul.f32 %v4908_v5, %v4904_v15  ;;  %4748 = vmatprep.subr.bf16.mxu0 %v4747_v28 }
0x19c8   :  { %4652 = vmatmul.mubr.msk.f32.vlgmr.msra.gmra.mrb[34].mxu1 %vm166_vm2, %v3209_v23 }
0x19c9   :  { %4750 = vmatpush3.bf16.msra.mxu0 %v4747_v28 }
0x1a97   :  { %v3282_v30 = vpop.f32.mrb[36].mxu0 }
0x1a98   :  { %3380 = vrot.lane.b32.xlu0 %v3282_v30, %s5907_s3  ;;  %v4648_v32 = vpop.f32.mrb[37].mxu0  ;;  %v4777_v30 = vpack.c.bf16 %v4222_v25, %v4220_v24  ;;  %v4244_v24 = vld [vmem:[%s5847_s14 + $0x168] sm:$0xff] }
0x1a9b   :  { %v3358_v12 = vpop.f32.mrb[34].mxu1 }
0x1a9c   :  { %3382 = vrot.lane.b32.xlu1 %v3358_v12, %s5907_s3  ;;  %v4653_v33 = vpop.f32.mrb[35].mxu1  ;;  %v4779_v12 = vpack.c.bf16 %v4227_v27, %v4225_v26  ;;  %v4261_v26 = vld [vmem:[%s5847_s14 + $0x1f0] sm:$0xff]  ;;  %v4262_v27 = vld [vmem:[%s5847_s14 + $0x1f8] sm:$0xff] }
0x1a9d   :  { %v4224_v33 = vld [vmem:[%s5845_s12 + $0x60] sm:$0xff] }
0x1a9e   :  { %v4781_v29 = vpack.c.bf16 %v4226_v31, %v4224_v33  ;;  %v3756_v31 = vlaneseq }
0x1b0a   :  { %v3381_v40 = vpop.permute.xlu0 %3380 }
0x1b0b   :  { %v3390_v41 = vsel %vm1539_vm4, %v3388_v39, %v3381_v40  ;;  %v4231_v39 = vld [vmem:[%s5847_s14 + $0x100] sm:$0xff] }
0x1b0c   :  { %4662 = vmatprep.mubr.msk.f32.mxu0 %vm81_vm0, %v3390_v41  ;;  %v4249_v41 = vld [vmem:[%s5847_s14 + $0x190] sm:$0xff] }
0x1b0e   :  { %v3383_v44 = vpop.permute.xlu1 %3382 }
0x1b0f   :  { %v3391_v45 = vsel %vm1539_vm4, %v3389_v43, %v3383_v44  ;;  %v4787_v43 = vpack.c.bf16 %v4250_v42, %v4249_v41  ;;  %v4233_v44 = vld [vmem:[%s5847_s14 + $0x110] sm:$0xff]  ;;  %v4228_v41 = vld [vmem:[%s5846_s13 + $0x2] sm:$0x3] }
0x1b10   :  { %4663 = vmatmul.mubr.msk.f32.vlgmr.msra.gmra.mrb[38].mxu0 %vm81_vm0, %v3391_v45  ;;  %v4234_v45 = vld [vmem:[%s5847_s14 + $0x118] sm:$0xff] }
0x1be3   :  { %v4664_v47 = vpop.f32.mrb[38].mxu0 }
0x1be4   :  { %v3483_v48 = vadd.f32 %v4664_v47, %v4193_v34  ;;  %v3477_v49 = vpop.f32.mrb[39].mxu0  ;;  %v4251_v47 = vld [vmem:[%s5847_s14 + $0x1a0] sm:$0xff] }
0x1be5   :  { %v3478_v51 = vadd.f32 %v4193_v34, %v3477_v49  ;;  %v4789_v34 = vpack.c.bf16 %v4234_v45, %v4233_v44 }
0x1be6   :  { %v3487_v53 = vadd.f32 %v3483_v48, %v5394_v58  ;;  %v4252_v48 = vld [vmem:[%s5847_s14 + $0x1a8] sm:$0xff] }
0x1be7   :  { %v3486_v54 = vadd.f32 %v3478_v51, %v5392_v57  ;;  %v4200_v57 = vld [vmem:[%s5841_s8 + $0x20] sm:$0xff]  ;;  %v4791_v49 = vpack.c.bf16 %v4252_v48, %v4251_v47 }
0x1be8   :  { %v3495_v36 = vsel %vm81_vm0, %v3487_v53, 0.0  ;;  %v4751_v4 = vpack.c.bf16 %v4201_v3, %v4200_v57  ;;  %v4208_v51 = vld [vmem:[%s5843_s10 + $0x40] sm:$0xff]  ;;  %v4256_v3 = vld [vmem:[%s5847_s14 + $0x1c8] sm:$0xff] }
0x1be9   :  { %3496 = vadd.xlane.f32.xlu1 %v3495_v36  ;;  %v3492_v55 = vsel %vm81_vm0, %v3486_v54, 0.0  ;;  %v4255_v57 = vld [vmem:[%s5847_s14 + $0x1c0] sm:$0xff] }
0x1bea   :  { %3493 = vadd.xlane.f32.xlu0 %v3492_v55  ;;  %4752 = vmatprep.subr.bf16.mxu1 %v4751_v4  ;;  %v4236_v55 = vld [vmem:[%s5847_s14 + $0x128] sm:$0xff] }
0x1beb   :  { %4754 = vmatpush3.bf16.msra.mxu1 %v4751_v4  ;;  %v4799_v4 = vpack.c.bf16 %v4256_v3, %v4255_v57 }
0x1bec   :  { %4756 = vmatprep.subr.bf16.mxu1 %v4755_v9 }
0x1bef   :  { %4758 = vmatpush3.bf16.msra.mxu1 %v4755_v9  ;;  %v4239_v9 = vld [vmem:[%s5847_s14 + $0x140] sm:$0xff] }
0x1bf0   :  { %4776 = vmatprep.subr.bf16.mxu1 %v4775_v46  ;;  %v4257_v46 = vld [vmem:[%s5847_s14 + $0x1d0] sm:$0xff] }
0x1c76   :  { %v3497_v56 = vpop.xlane.xlu1 %3496 }
0x1c77   :  { %v3499_v59 = vmul.f32 0.03125, %v3497_v56  ;;  %v3494_v60 = vpop.xlane.xlu0 %3493 }
0x1c78   :  { %v3498_v62 = vmul.f32 0.03125, %v3494_v60  ;;  %v4254_v60 = vld [vmem:[%s5847_s14 + $0x1b8] sm:$0xff] }
0x1c79   :  { %v3501_v50 = vsub.f32 %v3487_v53, %v3499_v59  ;;  %v4209_v53 = vld [vmem:[%s5843_s10 + $0x48] sm:$0xff]  ;;  %v4253_v59 = vld [vmem:[%s5847_s14 + $0x1b0] sm:$0xff] }
0x1c7a   :  { %v3500_v0 = vsub.f32 %v3486_v54, %v3498_v62  ;;  %v4235_v54 = vld [vmem:[%s5847_s14 + $0x120] sm:$0xff]  ;;  %v4759_v36 = vpack.c.bf16 %v4209_v53, %v4208_v51  ;;  %v4795_v62 = vpack.c.bf16 %v4254_v60, %v4253_v59 }
0x1c7b   :  { %v3503_v2 = vmul.f32 %v3501_v50, %v3501_v50  ;;  %v4793_v56 = vpack.c.bf16 %v4236_v55, %v4235_v54 }
0x1c7c   :  { %v3502_v1 = vmul.f32 %v3500_v0, %v3500_v0  ;;  %4760 = vmatprep.subr.bf16.mxu0 %v4759_v36 }
0x1c7d   :  { %v3507_v58 = vsel %vm81_vm0, %v3503_v2, 0.0  ;;  %4762 = vmatpush3.bf16.msra.mxu0 %v4759_v36  ;;  %v4238_v2 = vld [vmem:[%s5847_s14 + $0x138] sm:$0xff] }
0x1c7e   :  { %v3504_v52 = vsel %vm81_vm0, %v3502_v1, 0.0  ;;  %v4237_v1 = vld [vmem:[%s5847_s14 + $0x130] sm:$0xff] }
0x1c7f   :  { %3505 = vadd.xlane.f32.xlu0 %v3504_v52 }
0x1c83   :  { %3508 = vadd.xlane.f32.xlu0 %v3507_v58  ;;  %v4797_v58 = vpack.c.bf16 %v4238_v2, %v4237_v1 }
0x1d0c   :  { %v3506_v14 = vpop.xlane.xlu0 %3505 }
0x1d0d   :  { %v3510_v17 = vmul.f32 0.03125, %v3506_v14  ;;  %v4258_v14 = vld [vmem:[%s5847_s14 + $0x1d8] sm:$0xff] }
0x1d0f   :  { %v3512_v16 = vadd.f32 1e-12, %v3510_v17  ;;  %v4801_v17 = vpack.c.bf16 %v4240_v11, %v4239_v9 }
0x1d10   :  { %v3509_v63 = vpop.xlane.xlu0 %3508 }
0x1d11   :  { %4909 = vrsqrt.f32 %v3512_v16  ;;  %v3511_v15 = vmul.f32 0.03125, %v3509_v63  ;;  %v4803_v16 = vpack.c.bf16 %v4258_v14, %v4257_v46  ;;  %v4214_v63 = vld [vmem:[%s5843_s10 + $0x70] sm:$0xff] }
0x1d13   :  { %v3513_v22 = vadd.f32 1e-12, %v3511_v15  ;;  %v4215_v15 = vld [vmem:[%s5843_s10 + $0x78] sm:$0xff] }
0x1d15   :  { %4911 = vrsqrt.f32 %v3513_v22  ;;  %v4241_v22 = vld [vmem:[%s5847_s14 + $0x150] sm:$0xff] }
0x1d1b   :  { %v4910_v18 = vpop.eup %4909 }
0x1d1c   :  { %v3516_v20 = vmul.f32 %v4910_v18, %v3500_v0  ;;  %v4211_v0 = vld [vmem:[%s5843_s10 + $0x58] sm:$0xff]  ;;  %v4771_v18 = vpack.c.bf16 %v4215_v15, %v4214_v63 }
0x1d1e   :  { %v3524_v7 = vmul.f32 %v4198_v19, %v3516_v20 }
0x1d1f   :  { %v4912_v5 = vpop.eup %4911 }
0x1d20   :  { %v3517_v23 = vmul.f32 %v4912_v5, %v3501_v50  ;;  %v5626_v61 = vadd.f32 %v4199_v21, %v3524_v7  ;;  %v4210_v50 = vld [vmem:[%s5843_s10 + $0x50] sm:$0xff]  ;;  %v4260_v7 = vld [vmem:[%s5847_s14 + $0x1e8] sm:$0xff] }
0x1d21   :  { %v4763_v52 = vpack.c.bf16 %v4211_v0, %v4210_v50 }
0x1d22   :  { %v3525_v28 = vmul.f32 %v4198_v19, %v3517_v23  ;;  %4673 = vmatprep.mubr.msk.f32.mxu1 %vm81_vm0, %v5626_v61  ;;  %v4242_v19 = vld [vmem:[%s5847_s14 + $0x158] sm:$0xff]  ;;  %v4243_v23 = vld [vmem:[%s5847_s14 + $0x160] sm:$0xff] }
0x1d23   :  { %4764 = vmatprep.subr.bf16.mxu0 %v4763_v52  ;;  %v4805_v20 = vpack.c.bf16 %v4242_v19, %v4241_v22  ;;  %v4809_v25 = vpack.c.bf16 %v4244_v24, %v4243_v23 }
0x1d24   :  { %v5642_v32 = vadd.f32 %v4199_v21, %v3525_v28  ;;  %4766 = vmatpush3.bf16.msra.mxu0 %v4763_v52  ;;  %v4259_v21 = vld [vmem:[%s5847_s14 + $0x1e0] sm:$0xff]  ;;  %v4245_v28 = vld [vmem:[%s5847_s14 + $0x170] sm:$0xff] }
0x1d25   :  { %4768 = vmatprep.subr.bf16.mxu0 %v4767_v10  ;;  %v4807_v5 = vpack.c.bf16 %v4260_v7, %v4259_v21 }
0x1d26   :  { %4674 = vmatmul.mubr.msk.f32.vlgmr.msra.gmra.mrb[36].mxu1 %vm81_vm0, %v5642_v32 }
0x1d27   :  { %4778 = vmatpush1.bf16.msra.mxu1 %v4777_v30  ;;  %3830 = vmatprep.mubr.f32.mxu1 %v4959_v8  ;;  %v4811_v30 = vpack.c.bf16 %v4262_v27, %v4261_v26 }
0x1d28   :  { %4780 = vmatprep.subr.bf16.mxu1 %v4779_v12  ;;  %4770 = vmatpush3.bf16.msra.mxu0 %v4767_v10  ;;  %v4246_v12 = vld [vmem:[%s5847_s14 + $0x178] sm:$0xff] }
0x1d29   :  { %4772 = vmatprep.subr.bf16.mxu0 %v4771_v18  ;;  %v4813_v33 = vpack.c.bf16 %v4246_v12, %v4245_v28 }
0x1d2b   :  { %4782 = vmatpush1.bf16.msra.mxu1 %v4781_v29  ;;  %v3757_v29 = vshrl.u32 %v3756_v31, 7 }
0x1d2c   :  { %4784 = vmatprep.subr.bf16.mxu1 %v4783_v38  ;;  %4774 = vmatpush3.bf16.msra.mxu0 %v4771_v18 }
0x1d2d   :  { %v3762_v42 = vsub.s32 1, %v3757_v29 }
0x1d2e   :  { %4229 = vmatmul.mubr.msk.f32.vlgmr.msra.gmra.mrb[38].mxu1 %vm81_vm0, %v5626_v61 }
0x1d2f   :  { %3836 = vmatprep.mubr.f32.mxu1 %v4959_v8  ;;  %v4232_v8 = vld [vmem:[%s5847_s14 + $0x108] sm:$0xff]  ;;  %v3763_v48 = vrot.slane %v4228_v41, %v3762_v42 }
0x1d30   :  { %v4785_v40 = vpack.c.bf16 %v4232_v8, %v4231_v39  ;;  %v3758_v8 = vsub.s32 0, %v3757_v29 }
0x1d32   :  { %4230 = vmatmul.mubr.msk.f32.gmra.mrb[40].mxu1 %vm81_vm0, %v5642_v32 }
0x1d33   :  { %4786 = vmatpush3.bf16.msra.mxu1 %v4785_v40 }
0x1d34   :  { %4788 = vmatprep.subr.bf16.mxu1 %v4787_v43 }
0x1d37   :  { %4790 = vmatpush3.bf16.msra.mxu1 %v4789_v34  ;;  %v3759_v34 = vrot.slane %v4228_v41, %v3758_v8 }
0x1d38   :  { %4792 = vmatprep.subr.bf16.mxu1 %v4791_v49 }
0x1d3b   :  { %4794 = vmatpush3.bf16.msra.mxu1 %v4793_v56 }
0x1d3c   :  { %4796 = vmatprep.subr.bf16.mxu1 %v4795_v62 }
0x1d3f   :  { %4798 = vmatpush3.bf16.msra.mxu1 %v4797_v58 }
0x1d40   :  { %4800 = vmatprep.subr.bf16.mxu1 %v4799_v4 }
0x1d43   :  { %4802 = vmatpush3.bf16.msra.mxu1 %v4801_v17 }
0x1d44   :  { %4804 = vmatprep.subr.bf16.mxu1 %v4803_v16 }
0x1d47   :  { %4806 = vmatpush3.bf16.msra.mxu1 %v4805_v20 }
0x1d48   :  { %4808 = vmatprep.subr.bf16.mxu1 %v4807_v5 }
0x1d4b   :  { %4810 = vmatpush3.bf16.msra.mxu1 %v4809_v25 }
0x1d4c   :  { %4812 = vmatprep.subr.bf16.mxu1 %v4811_v30 }
0x1d4f   :  { %4814 = vmatpush3.bf16.msra.mxu1 %v4813_v33 }
0x1df9   :  { %v4675_v37 = vpop.f32.mrb[36].mxu1 }
0x1dfa   :  { %v3625_v38 = vadd.f32 %v4675_v37, %v4205_v35  ;;  %v3619_v39 = vpop.f32.mrb[37].mxu1 }
0x1dfb   :  { %v3620_v40 = vadd.f32 %v4205_v35, %v3619_v39 }
0x1dfc   :  { %v3631_v43 = vmul.f32 0.044715, %v3625_v38  ;;  %v3629_v25 = vmul.f32 0.5, %v3625_v38 }
0x1dfd   :  { %v3630_v44 = vmul.f32 0.044715, %v3620_v40  ;;  %v3628_v23 = vmul.f32 0.5, %v3620_v40 }
0x1dfe   :  { %v3633_v45 = vmul.f32 %v3631_v43, %v3625_v38 }
0x1dff   :  { %v3632_v47 = vmul.f32 %v3630_v44, %v3620_v40 }
0x1e00   :  { %v3635_v49 = vmul.f32 %v3633_v45, %v3625_v38  ;;  %v4217_v45 = vld [vmem:[%s5844_s11 + $0x1] ss:$0 sm:$0xff] }
0x1e01   :  { %v3634_v51 = vmul.f32 %v3632_v47, %v3620_v40  ;;  %v3832_v53 = vpop.f32.mrb[38].mxu1 }
0x1e02   :  { %v3637_v54 = vadd.f32 %v3635_v49, %v3625_v38  ;;  %v3833_v36 = vadd.f32 %v3832_v53, %v3759_v34  ;;  %v3834_v55 = vpop.f32.mrb[39].mxu1 }
0x1e03   :  { %v3636_v56 = vadd.f32 %v3634_v51, %v3620_v40  ;;  %v3835_v59 = vadd.f32 %v3834_v55, %v3763_v48 }
0x1e04   :  { %v3639_v60 = vmul.f32 0.7978845, %v3637_v54  ;;  %v3847_v62 = vmul.f32 0.044715, %v3833_v36  ;;  %v3843_v29 = vmul.f32 0.5, %v3833_v36 }
0x1e05   :  { %v3848_v50 = vmul.f32 0.044715, %v3835_v59  ;;  %v3838_v0 = vpop.f32.mrb[40].mxu1  ;;  %v3638_v1 = vmul.f32 0.7978845, %v3636_v56  ;;  %v3844_v33 = vmul.f32 0.5, %v3835_v59 }
0x1e06   :  { %4913 = vtanh.f32 %v3639_v60  ;;  %v3851_v52 = vmul.f32 %v3847_v62, %v3833_v36  ;;  %v3839_v2 = vadd.f32 %v3838_v0, %v3759_v34  ;;  %v3840_v58 = vpop.f32.mrb[41].mxu1  ;;  %v4264_v56 = vld [vmem:[%s5848_s15 + $0x1] ss:$0 sm:$0xff] }
0x1e07   :  { %v3852_v57 = vmul.f32 %v3848_v50, %v3835_v59  ;;  %v3841_v3 = vadd.f32 %v3840_v58, %v3763_v48  ;;  %4915 = vtanh.f32 %v3638_v1 }
0x1e08   :  { %v3855_v4 = vmul.f32 %v3851_v52, %v3833_v36  ;;  %v3849_v6 = vmul.f32 0.044715, %v3839_v2  ;;  %v3845_v42 = vmul.f32 0.5, %v3839_v2 }
0x1e09   :  { %v3850_v13 = vmul.f32 0.044715, %v3841_v3  ;;  %v3856_v9 = vmul.f32 %v3852_v57, %v3835_v59  ;;  %v3846_v38 = vmul.f32 0.5, %v3841_v3 }
0x1e0a   :  { %v3859_v10 = vadd.f32 %v3855_v4, %v3833_v36  ;;  %v3853_v11 = vmul.f32 %v3849_v6, %v3839_v2 }
0x1e0b   :  { %v3854_v46 = vmul.f32 %v3850_v13, %v3841_v3  ;;  %v3860_v14 = vadd.f32 %v3856_v9, %v3835_v59 }
0x1e0c   :  { %v3863_v17 = vmul.f32 0.7978845, %v3859_v10  ;;  %v3857_v16 = vmul.f32 %v3853_v11, %v3839_v2 }
0x1e0d   :  { %v3864_v63 = vmul.f32 0.7978845, %v3860_v14  ;;  %v3858_v15 = vmul.f32 %v3854_v46, %v3841_v3 }
0x1e0e   :  { %4917 = vtanh.f32 %v3863_v17  ;;  %v3861_v22 = vadd.f32 %v3857_v16, %v3839_v2 }
0x1e0f   :  { %4919 = vtanh.f32 %v3864_v63  ;;  %v3862_v18 = vadd.f32 %v3858_v15, %v3841_v3 }
0x1e10   :  { %v4914_v19 = vpop.eup %4913  ;;  %v3865_v20 = vmul.f32 0.7978845, %v3861_v22 }
0x1e11   :  { %v4916_v21 = vpop.eup %4915  ;;  %v3643_v7 = vadd.f32 1.0, %v4914_v19  ;;  %v3866_v5 = vmul.f32 0.7978845, %v3862_v18 }
0x1e12   :  { %v3642_v24 = vadd.f32 1.0, %v4916_v21  ;;  %4921 = vtanh.f32 %v3865_v20 }
0x1e13   :  { %4923 = vtanh.f32 %v3866_v5  ;;  %v3645_v27 = vmul.f32 %v3643_v7, %v3629_v25 }
0x1e14   :  { %v3644_v26 = vmul.f32 %v3642_v24, %v3628_v23 }
0x1e16   :  { %4692 = vmatprep.mubr.msk.f32.mxu0 %vm1806_vm5, %v3644_v26 }
0x1e17   :  { %4693 = vmatmul.mubr.msk.f32.vlgmr.msra.gmra.mrb[40].mxu0 %vm1806_vm5, %v3645_v27 }
0x1e18   :  { %v4918_v28 = vpop.eup %4917 }
0x1e19   :  { %v4920_v30 = vpop.eup %4919  ;;  %v3871_v12 = vadd.f32 1.0, %v4918_v28 }
0x1e1a   :  { %v3872_v31 = vadd.f32 1.0, %v4920_v30 }
0x1e1b   :  { %v3875_v8 = vmul.f32 %v3871_v12, %v3843_v29  ;;  %v4267_v29 = vld [vmem:[%s5849_s16 + $0x1] ss:$0 sm:$0xff] }
0x1e1c   :  { %v4922_v35 = vpop.eup %4921  ;;  %v3876_v37 = vmul.f32 %v3872_v31, %v3844_v33 }
0x1e1d   :  { %v4924_v39 = vpop.eup %4923  ;;  %v3873_v40 = vadd.f32 1.0, %v4922_v35 }
0x1e1e   :  { %3984 = vmatprep.mubr.f32.mxu1 %v3876_v37  ;;  %v3874_v41 = vadd.f32 1.0, %v4924_v39 }
0x1e1f   :  { %3985 = vmatmul.mubr.f32.vlgmr.msra.gmra.mrb[42].mxu1 %v3875_v8  ;;  %v3877_v44 = vmul.f32 %v3873_v40, %v3845_v42  ;;  %v4268_v8 = vld [vmem:[%s5850_s17 + $0x1] ss:$0 sm:$0xff] }
0x1e20   :  { %v3878_v43 = vmul.f32 %v3874_v41, %v3846_v38 }
0x1e22   :  { %3989 = vmatprep.mubr.f32.mxu1 %v3878_v43 }
0x1e23   :  { %3990 = vmatmul.mubr.f32.gmra.mrb[44].mxu1 %v3877_v44 }
0x1eea   :  { %v4694_v34 = vpop.f32.mrb[40].mxu0 }
0x1eeb   :  { %v3741_v47 = vadd.f32 %v4694_v34, %v4217_v45  ;;  %v3735_v48 = vpop.f32.mrb[41].mxu0 }
0x1eec   :  { %v3736_v49 = vadd.f32 %v4217_v45, %v3735_v48  ;;  %v4271_v48 = vld [vmem:[%s5851_s18 + $0x1] ss:$0 sm:$0xff] }
0x1eed   :  { %v3998_v51 = vadd.f32 %v3741_v47, %v5642_v32 }
0x1eee   :  { %v3997_v53 = vadd.f32 %v3736_v49, %v5626_v61 }
0x1eef   :  { %v4006_v54 = vsel %vm81_vm0, %v3998_v51, 0.0 }
0x1ef0   :  { %4007 = vadd.xlane.f32.xlu0 %v4006_v54  ;;  %v4003_v36 = vsel %vm81_vm0, %v3997_v53, 0.0 }
0x1ef1   :  { %4004 = vadd.xlane.f32.xlu1 %v4003_v36 }
0x1ef2   :  { %v4425_v55 = vpop.f32.mrb[42].mxu1 }
0x1ef3   :  { %v4426_v59 = vpop.f32.mrb[43].mxu1 }
0x1ef4   :  { %v4427_v60 = vadd.f32 %v4426_v59, %v4425_v55 }
0x1ef6   :  { %v3987_v62 = vadd.f32 %v4427_v60, %v4264_v56  ;;  %v4428_v50 = vpop.f32.mrb[44].mxu1 }
0x1ef7   :  { %v4429_v0 = vpop.f32.mrb[45].mxu1 }
0x1ef8   :  { %v3995_v1 = vadd.f32 %v3987_v62, %v3736_v49  ;;  %v4430_v52 = vadd.f32 %v4429_v0, %v4428_v50 }
0x1efa   :  { %v3992_v2 = vadd.f32 %v4430_v52, %v4264_v56  ;;  %v4045_v58 = vadd.f32 %v3995_v1, %v5626_v61 }
0x1efc   :  { %v4051_v57 = vsel %vm81_vm0, %v4045_v58, 0.0  ;;  %v3996_v3 = vadd.f32 %v3992_v2, %v3741_v47 }
0x1efd   :  { %4052 = vadd.xlane.f32.xlu1 %v4051_v57 }
0x1efe   :  { %v4046_v4 = vadd.f32 %v3996_v3, %v5642_v32 }
0x1f00   :  { %v4054_v6 = vsel %vm81_vm0, %v4046_v4, 0.0 }
0x1f01   :  { %4055 = vadd.xlane.f32.xlu0 %v4054_v6 }
0x1f7d   :  { %v4008_v13 = vpop.xlane.xlu0 %4007 }
0x1f7e   :  { %v4010_v9 = vmul.f32 0.03125, %v4008_v13  ;;  %v4005_v10 = vpop.xlane.xlu1 %4004 }
0x1f7f   :  { %v4009_v11 = vmul.f32 0.03125, %v4005_v10 }
0x1f80   :  { %v4012_v46 = vsub.f32 %v3998_v51, %v4010_v9  ;;  %v4272_v51 = vld [vmem:[%s5852_s19 + $0x1] ss:$0 sm:$0xff] }
0x1f81   :  { %v4011_v14 = vsub.f32 %v3997_v53, %v4009_v11 }
0x1f82   :  { %v4014_v17 = vmul.f32 %v4012_v46, %v4012_v46 }
0x1f83   :  { %v4013_v16 = vmul.f32 %v4011_v14, %v4011_v14 }
0x1f84   :  { %v4018_v63 = vsel %vm81_vm0, %v4014_v17, 0.0 }
0x1f85   :  { %4019 = vadd.xlane.f32.xlu0 %v4018_v63  ;;  %v4015_v61 = vsel %vm81_vm0, %v4013_v16, 0.0 }
0x1f86   :  { %4016 = vadd.xlane.f32.xlu1 %v4015_v61 }
0x1f8a   :  { %v4053_v15 = vpop.xlane.xlu1 %4052 }
0x1f8b   :  { %v4057_v22 = vmul.f32 0.03125, %v4053_v15 }
0x1f8d   :  { %v4059_v32 = vsub.f32 %v4045_v58, %v4057_v22 }
0x1f8e   :  { %v4056_v18 = vpop.xlane.xlu0 %4055 }
0x1f8f   :  { %v4058_v19 = vmul.f32 0.03125, %v4056_v18  ;;  %v4061_v20 = vmul.f32 %v4059_v32, %v4059_v32 }
0x1f91   :  { %v4060_v21 = vsub.f32 %v4046_v4, %v4058_v19  ;;  %v4063_v7 = vsel %vm81_vm0, %v4061_v20, 0.0 }
0x1f92   :  { %4064 = vadd.xlane.f32.xlu1 %v4063_v7 }
0x1f93   :  { %v4062_v5 = vmul.f32 %v4060_v21, %v4060_v21 }
0x1f95   :  { %v4066_v23 = vsel %vm81_vm0, %v4062_v5, 0.0 }
0x1f96   :  { %4067 = vadd.xlane.f32.xlu0 %v4066_v23 }
0x2012   :  { %v4020_v24 = vpop.xlane.xlu0 %4019 }
0x2013   :  { %v4022_v25 = vmul.f32 0.03125, %v4020_v24  ;;  %v4017_v26 = vpop.xlane.xlu1 %4016 }
0x2014   :  { %v4021_v27 = vmul.f32 0.03125, %v4017_v26 }
0x2015   :  { %v4024_v28 = vadd.f32 1e-12, %v4022_v25 }
0x2016   :  { %v4023_v30 = vadd.f32 1e-12, %v4021_v27 }
0x2017   :  { %4925 = vrsqrt.f32 %v4024_v28 }
0x2018   :  { %4927 = vrsqrt.f32 %v4023_v30 }
0x201f   :  { %v4065_v12 = vpop.xlane.xlu1 %4064 }
0x2020   :  { %v4069_v33 = vmul.f32 0.03125, %v4065_v12 }
0x2021   :  { %v4926_v31 = vpop.eup %4925 }
0x2022   :  { %v4928_v35 = vpop.eup %4927  ;;  %v4028_v37 = vmul.f32 %v4926_v31, %v4012_v46  ;;  %v4071_v39 = vadd.f32 1e-12, %v4069_v33 }
0x2023   :  { %v4027_v40 = vmul.f32 %v4928_v35, %v4011_v14  ;;  %v4068_v38 = vpop.xlane.xlu0 %4067 }
0x2024   :  { %v4036_v41 = vmul.f32 %v4267_v29, %v4028_v37  ;;  %4929 = vrsqrt.f32 %v4071_v39  ;;  %v4070_v42 = vmul.f32 0.03125, %v4068_v38 }
0x2025   :  { %v4035_v43 = vmul.f32 %v4267_v29, %v4027_v40 }
0x2026   :  { %v4044_v44 = vadd.f32 %v4268_v8, %v4036_v41  ;;  %v4072_v45 = vadd.f32 1e-12, %v4070_v42 }
0x2027   :  { %v4043_v34 = vadd.f32 %v4268_v8, %v4035_v43 }
0x2028   :  { %4094 = vst.msk [vmem:[#allocation2 + $0x8] sm:$0xff] %vm81_vm0, %v4044_v44  ;;  %4931 = vrsqrt.f32 %v4072_v45 }
0x2029   :  { %4093 = vst.msk [vmem:[#allocation2] sm:$0xff] %vm81_vm0, %v4043_v34 }
0x202e   :  { %v4930_v47 = vpop.eup %4929 }
0x202f   :  { %v4075_v49 = vmul.f32 %v4930_v47, %v4059_v32 }
0x2031   :  { %v4083_v53 = vmul.f32 %v4271_v48, %v4075_v49 }
0x2032   :  { %v4932_v54 = vpop.eup %4931 }
0x2033   :  { %v4091_v36 = vadd.f32 %v4272_v51, %v4083_v53  ;;  %v4076_v55 = vmul.f32 %v4932_v54, %v4060_v21 }
0x2035   :  { %4096 = vst.msk [vmem:[#allocation2 + $0x10] sm:$0xff] %vm81_vm0, %v4091_v36  ;;  %v4084_v56 = vmul.f32 %v4271_v48, %v4076_v55 }
0x2037   :  { %v4092_v59 = vadd.f32 %v4272_v51, %v4084_v56 }
0x2039   :  { %4097 = vst.msk [vmem:[#allocation2 + $0x18] sm:$0xff] %vm81_vm0, %v4092_v59 }
0x203a   :  { %4946 = shalt.err (!%p4943_p4)
}
0x203b   :  { %s4947_s21 = scalar_lea.hbm %s5853_s20, 512 }
0x203c   :  { %p4948_p5 = scmp.ne.s32.totalorder %s5853_s20, %s4947_s21  ;;  %p4951_p6 = scmp.lt.u32.totalorder %s4947_s21, %s5853_s20 }
0x203e   :  { %p4953_p7 = pnand %p4951_p6, %p4948_p5 }
0x2040   :  { %4956 = shalt.err (!%p4953_p7)
}
0x2041   :  { %s4976_s2 = smov 128  }
0x2042   :  { %4109 = dma.vmem_to_hbm [thread:$0]  %s4104_s6, 512, %s5853_s20, [#allocation3], %s4976_s2, %s4976_s2, %s5905_s22  }
0x2043   :  { %4957 = dma.done.wait [#allocation3], 512  }
0x2044   :  { %4958 = vsyncadd [#allocation3], 4294966784 }
0x2045   :  { %4113 = vsyncpa [#allocation3], 1 }

</bundles_post_ra>
